<compile_context>
chip_gen: v7x
topology: tpu7x:2x2x1
jax: 0.10.0
libtpu: 0.0.40
codegen_flags: <defaults>
</compile_context>

<pallas_src>
import jax
import jax.numpy as jnp
from jax.experimental import pallas as pl
from jax.experimental.pallas import tpu as pltpu

# ----- small synthetic config (stands in for indobert-base) -----
VOCAB = 64
HIDDEN = 32
N_LAYERS = 2
N_HEADS = 4
HEAD_DIM = HIDDEN // N_HEADS
INTERMEDIATE = 64
MAX_POS = 16
TYPE_VOCAB = 2
N_LABELS = 3          # args.vocab_label_size
BATCH = 2
SEQ = 8
LN_EPS = 1e-12
BS = BATCH * SEQ

# ----- packed-slab layout constants (all offsets sublane-(8)-aligned) -----
GATHER_ROWS = VOCAB + 8                  # word rows + type rows (padded 2 -> 8)
TYPE_OFF = VOCAB
POS_OFF = GATHER_ROWS                    # 72
EMB_LN_G_ROW = POS_OFF + SEQ             # 80
EMB_LN_B_ROW = EMB_LN_G_ROW + 1          # 81
EMB_ROWS = 88                            # padded to multiple of 8

W_COLS = 3 * HIDDEN                      # 96 = widest weight block (wqkv)
QKV_R, WO_R, W1_R, W2_R = 0, HIDDEN, 2 * HIDDEN, 3 * HIDDEN
W_ROWS = 3 * HIDDEN + INTERMEDIATE       # 160 rows per layer

P_ROWS, P_COLS = 8, 3 * HIDDEN           # 8 small vectors per layer, widest = bqkv (96)
(ROW_BQKV, ROW_BO, ROW_LN1G, ROW_LN1B,
 ROW_B1, ROW_B2, ROW_LN2G, ROW_LN2B) = range(8)

OUT_PAD = 128                            # lane-dense padded logits width
CLS_ROWS = 40                            # HIDDEN weight rows + bias row, padded to x8


# ---------------- in-kernel helpers ----------------

def _layer_norm(x, gamma, beta):
    mu = jnp.mean(x, axis=-1, keepdims=True)
    d = x - mu
    var = jnp.mean(d * d, axis=-1, keepdims=True)
    return d * jax.lax.rsqrt(var + LN_EPS) * gamma + beta


def _gelu_tanh(x):
    # TODO(synk): HF BERT uses the exact erf-based GELU; erf is not guaranteed to lower in
    # Mosaic, so the numerically very-close tanh approximation is used inside the kernel.
    c = 0.7978845608028654  # sqrt(2/pi)
    return 0.5 * x * (1.0 + jnp.tanh(c * (x + 0.044715 * x * x * x)))


# ---------------- single fused Pallas kernel (whole Model.forward) ----------------

def _fused_model_kernel(ids_ref, attn_bias_ref, mask_col_ref,
                        emb_ref, w_ref, p_ref, cls_ref, out_ref):
    f32 = jnp.float32
    bf16 = jnp.bfloat16

    # ----- embeddings: ONE combined word+type one-hot matmul + 3-D position add + LN -----
    ids = ids_ref[...]                                              # (B*S, 2) int32
    col = jax.lax.broadcasted_iota(jnp.int32, (BS, GATHER_ROWS), 1)
    one_hot = jnp.logical_or(col == ids[:, 0:1],                    # word row
                             col == ids[:, 1:2]).astype(f32)        # type row (offset VOCAB)
    wt = jnp.dot(one_hot, emb_ref[0:GATHER_ROWS, :],
                 preferred_element_type=f32)                        # (B*S, H) word + type
    pos = emb_ref[POS_OFF:POS_OFF + SEQ, :]                         # (S, H)
    x = (wt.reshape(BATCH, SEQ, HIDDEN) + pos[None, :, :]).reshape(BS, HIDDEN)
    x = _layer_norm(x,
                    emb_ref[EMB_LN_G_ROW:EMB_LN_G_ROW + 1, :],
                    emb_ref[EMB_LN_B_ROW:EMB_LN_B_ROW + 1, :])      # (B*S, H) f32

    bias3 = attn_bias_ref[...]                                      # (B, 1, S) additive -1e9, f32
    scale = 1.0 / (HEAD_DIM ** 0.5)

    # ----- transformer layers (unrolled; all intermediates stay in VMEM/vregs) -----
    for l in range(N_LAYERS):
        wl = w_ref[l]                                               # (160, 96) bf16
        sp = p_ref[l]                                               # (8, 96)  f32
        wqkv = wl[QKV_R:QKV_R + HIDDEN, :]                          # (H, 3H)
        wo = wl[WO_R:WO_R + HIDDEN, 0:HIDDEN]                       # (H, H)
        w1 = wl[W1_R:W1_R + HIDDEN, 0:INTERMEDIATE]                 # (H, I)
        w2 = wl[W2_R:W2_R + INTERMEDIATE, 0:HIDDEN]                 # (I, H)
        bqkv = sp[ROW_BQKV:ROW_BQKV + 1, :]
        bo = sp[ROW_BO:ROW_BO + 1, 0:HIDDEN]
        ln1g = sp[ROW_LN1G:ROW_LN1G + 1, 0:HIDDEN]
        ln1b = sp[ROW_LN1B:ROW_LN1B + 1, 0:HIDDEN]
        b1 = sp[ROW_B1:ROW_B1 + 1, 0:INTERMEDIATE]
        b2 = sp[ROW_B2:ROW_B2 + 1, 0:HIDDEN]
        ln2g = sp[ROW_LN2G:ROW_LN2G + 1, 0:HIDDEN]
        ln2b = sp[ROW_LN2B:ROW_LN2B + 1, 0:HIDDEN]

        # fused QKV projection: bf16 operands, f32 accumulation
        qkv = jnp.dot(x.astype(bf16), wqkv, preferred_element_type=f32) + bqkv   # (B*S, 3H)

        ctx_parts = []
        for h in range(N_HEADS):    # TODO(synk): heads unrolled (see header note)
            lo = h * HEAD_DIM
            q = qkv[:, lo:lo + HEAD_DIM].reshape(BATCH, SEQ, HEAD_DIM)
            k = qkv[:, HIDDEN + lo:HIDDEN + lo + HEAD_DIM].reshape(BATCH, SEQ, HEAD_DIM)
            v = qkv[:, 2 * HIDDEN + lo:2 * HIDDEN + lo + HEAD_DIM].reshape(BATCH, SEQ, HEAD_DIM)
            # contraction on trailing axes -> no k.T; bias/softmax math stays f32
            s = jnp.einsum("bqd,bkd->bqk", q.astype(bf16), k.astype(bf16),
                           preferred_element_type=f32) * scale + bias3
            m = jnp.max(s, axis=-1, keepdims=True)
            e = jnp.exp(s - m)
            p = e * pl.reciprocal(jnp.sum(e, axis=-1, keepdims=True), approx=True)
            ctx_h = jnp.einsum("bqk,bkd->bqd", p.astype(bf16), v.astype(bf16),
                               preferred_element_type=f32)
            ctx_parts.append(ctx_h.reshape(BS, HEAD_DIM))
        ctx = jnp.concatenate(ctx_parts, axis=-1)                   # (B*S, H)
        attn = jnp.dot(ctx.astype(bf16), wo, preferred_element_type=f32) + bo   # ONE Wo matmul

        h1 = _layer_norm(x + attn, ln1g, ln1b)

        ff = jnp.dot(h1.astype(bf16), w1, preferred_element_type=f32) + b1
        ff = _gelu_tanh(ff)
        ff = jnp.dot(ff.astype(bf16), w2, preferred_element_type=f32) + b2
        x = _layer_norm(h1 + ff, ln2g, ln2b)

    # ----- masked mean pool: sublane masked sum over S + EXACT divide -----
    mask_col = mask_col_ref[...]                                    # (B, S, 1) f32
    x3 = x.reshape(BATCH, SEQ, HIDDEN)
    pooled_sum = jnp.sum(x3 * mask_col, axis=1)                     # (B, H)
    denom = jnp.sum(mask_col, axis=1)                               # (B, 1) exact token count
    # NOTE: matches torch exactly (no divide-by-zero guard); all-padding row -> inf/nan.
    pooled = pooled_sum / denom

    # classifier into a lane-dense (B, 128) padded output; host slices [:, :N_LABELS]
    out_ref[...] = (jnp.dot(pooled, cls_ref[0:HIDDEN, :], preferred_element_type=f32)
                    + cls_ref[HIDDEN:HIDDEN + 1, :])


# ---------------- wrapper ----------------

def model_forward(src, seg, mask_src, params):
    """src, seg, mask_src: (B, S) int32. Returns logits (B, N_LABELS) (post-.squeeze())."""
    B, S = src.shape
    mask_f = mask_src.astype(jnp.float32)

    # tiny host-side layout packing only; all compute happens inside the fused kernel
    ids = jnp.stack([src.reshape(-1), VOCAB + seg.reshape(-1)], axis=-1).astype(jnp.int32)
    attn_bias = ((mask_f - 1.0) * 1e9).reshape(B, 1, S)             # additive key-padding bias
    mask_col = mask_f.reshape(B, S, 1)                              # pooling mask / count

    args = (ids, attn_bias, mask_col,
            params["emb_slab"], params["w_slab"], params["p_slab"], params["cls_slab"])

    vmem = pl.BlockSpec(memory_space=pltpu.MemorySpace.VMEM)        # whole array resident in VMEM
    logits = pl.pallas_call(
        _fused_model_kernel,
        in_specs=[vmem] * len(args),
        out_specs=vmem,
        out_shape=jax.ShapeDtypeStruct((B, OUT_PAD), jnp.float32),
    )(*args)

    # dropout(0.2) is identity in eval mode; .squeeze() is a no-op for (2, 3)
    return jnp.squeeze(logits[:, :N_LABELS])


# ---------------- deterministic parameter init + slab packing ----------------

def init_params(key):
    keys = iter(jax.random.split(key, 8))

    def nrm(shape, scale=0.02):
        return jax.random.normal(next(keys), shape, jnp.float32) * scale

    word_emb = nrm((VOCAB, HIDDEN))
    pos_emb = nrm((MAX_POS, HIDDEN))
    type_emb = nrm((TYPE_VOCAB, HIDDEN))
    wqkv = nrm((N_LAYERS, HIDDEN, 3 * HIDDEN))
    wo = nrm((N_LAYERS, HIDDEN, HIDDEN))
    w1 = nrm((N_LAYERS, HIDDEN, INTERMEDIATE))
    w2 = nrm((N_LAYERS, INTERMEDIATE, HIDDEN))
    cls_w = nrm((HIDDEN, N_LABELS))
    # biases = 0, LayerNorm gamma = 1 / beta = 0 (same synthetic init as before)

    # --- embedding slab (f32): [word | type(pad to 8) | pos | ln_g | ln_b | pad] x HIDDEN ---
    emb_slab = jnp.zeros((EMB_ROWS, HIDDEN), jnp.float32)
    emb_slab = emb_slab.at[0:VOCAB].set(word_emb)
    emb_slab = emb_slab.at[TYPE_OFF:TYPE_OFF + TYPE_VOCAB].set(type_emb)
    emb_slab = emb_slab.at[POS_OFF:POS_OFF + SEQ].set(pos_emb[:SEQ])
    emb_slab = emb_slab.at[EMB_LN_G_ROW].set(jnp.ones((HIDDEN,), jnp.float32))
    # EMB_LN_B_ROW stays zero

    # --- big per-layer weight slab (bf16 MXU operands), sublane-aligned blocks ---
    w_slab = jnp.zeros((N_LAYERS, W_ROWS, W_COLS), jnp.float32)
    w_slab = w_slab.at[:, QKV_R:QKV_R + HIDDEN, 0:3 * HIDDEN].set(wqkv)
    w_slab = w_slab.at[:, WO_R:WO_R + HIDDEN, 0:HIDDEN].set(wo)
    w_slab = w_slab.at[:, W1_R:W1_R + HIDDEN, 0:INTERMEDIATE].set(w1)
    w_slab = w_slab.at[:, W2_R:W2_R + INTERMEDIATE, 0:HIDDEN].set(w2)
    w_slab = w_slab.astype(jnp.bfloat16)

    # --- small per-layer vector slab (f32): one row per bias / LN param ---
    p_slab = jnp.zeros((N_LAYERS, P_ROWS, P_COLS), jnp.float32)
    p_slab = p_slab.at[:, ROW_LN1G, 0:HIDDEN].set(1.0)
    p_slab = p_slab.at[:, ROW_LN2G, 0:HIDDEN].set(1.0)
    # all biases + LN betas stay zero

    # --- classifier slab (f32): padded weight rows + bias row, lane-dense (128 wide) ---
    cls_slab = jnp.zeros((CLS_ROWS, OUT_PAD), jnp.float32)
    cls_slab = cls_slab.at[0:HIDDEN, 0:N_LABELS].set(cls_w)
    # bias row (row HIDDEN) stays zero

    return dict(emb_slab=emb_slab, w_slab=w_slab, p_slab=p_slab, cls_slab=cls_slab)


if __name__ == "__main__":
    key = jax.random.PRNGKey(0)
    pkey, dkey = jax.random.split(key)
    params = init_params(pkey)

    # Deterministic example batch (mimics Batch: src tokens, seg ids, mask = src != 0)
    src = jax.random.randint(dkey, (BATCH, SEQ), 1, VOCAB, dtype=jnp.int32)
    src = src.at[0, 6:].set(0)   # pad tail of sample 0
    src = src.at[1, 5:].set(0)   # pad tail of sample 1
    seg = jnp.zeros((BATCH, SEQ), dtype=jnp.int32)
    mask_src = (src != 0).astype(jnp.int32)

    forward = jax.jit(model_forward)
    conclusion = jax.block_until_ready(forward(src, seg, mask_src, params))

    # Model.predict: argmax over labels (done in plain JAX, as in the torch wrapper)
    preds = jax.block_until_ready(jnp.argmax(conclusion, axis=-1))

    assert conclusion.shape == (BATCH, N_LABELS)
    assert bool(jnp.all(jnp.isfinite(conclusion)))
    print("KERNEL_OK")
</pallas_src>

<mosaic_0001>
module attributes {stable_mosaic.version = 11 : i64} {
  func.func @_fused_model_kernel(%arg0: memref<16x2xi32, #tpu.memory_space<vmem>>, %arg1: memref<2x1x8xf32, #tpu.memory_space<vmem>>, %arg2: memref<2x8x1xf32, #tpu.memory_space<vmem>>, %arg3: memref<88x32xf32, #tpu.memory_space<vmem>>, %arg4: memref<2x160x96xbf16, #tpu.memory_space<vmem>>, %arg5: memref<2x8x96xf32, #tpu.memory_space<vmem>>, %arg6: memref<40x128xf32, #tpu.memory_space<vmem>>, %arg7: memref<2x128xf32, #tpu.memory_space<vmem>>) attributes {dimension_semantics = [], scalar_prefetch = 0 : i64, scratch_operands = 0 : i64, tpu.core_type = #tpu.core_type<tc>} {
    %c0 = arith.constant 0 : index
    %c0_0 = arith.constant 0 : index
    %0 = vector.load %arg0[%c0, %c0_0] : memref<16x2xi32, #tpu.memory_space<vmem>>, vector<16x2xi32>
    %1 = tpu.iota {dimensions = array<i32: 1>} : vector<16x72xi32>
    %2 = vector.extract_strided_slice %0 {offsets = [0, 0], sizes = [16, 1], strides = [1, 1]} : vector<16x2xi32> to vector<16x1xi32>
    %3 = vector.broadcast %2 : vector<16x1xi32> to vector<16x72xi32>
    %4 = arith.cmpi eq, %1, %3 : vector<16x72xi32>
    %5 = vector.extract_strided_slice %0 {offsets = [0, 1], sizes = [16, 1], strides = [1, 1]} : vector<16x2xi32> to vector<16x1xi32>
    %6 = vector.broadcast %5 : vector<16x1xi32> to vector<16x72xi32>
    %7 = arith.cmpi eq, %1, %6 : vector<16x72xi32>
    %8 = arith.ori %4, %7 : vector<16x72xi1>
    %9 = arith.extui %8 : vector<16x72xi1> to vector<16x72xi32>
    %10 = arith.sitofp %9 : vector<16x72xi32> to vector<16x72xf32>
    %c0_1 = arith.constant 0 : index
    %c0_2 = arith.constant 0 : index
    %11 = vector.load %arg3[%c0_1, %c0_2] : memref<88x32xf32, #tpu.memory_space<vmem>>, vector<72x32xf32>
    %cst = arith.constant dense<0.000000e+00> : vector<16x32xf32>
    %12 = tpu.matmul %10, %11, %cst {dimension_numbers = #tpu.dot_dimension_numbers<[1], [0], [0], [1], [0, 0, 1, 1], [], []>} : vector<16x72xf32>, vector<72x32xf32>, vector<16x32xf32> -> vector<16x32xf32>
    %c72 = arith.constant 72 : index
    %c0_3 = arith.constant 0 : index
    %13 = vector.load %arg3[%c72, %c0_3] : memref<88x32xf32, #tpu.memory_space<vmem>>, vector<8x32xf32>
    %14 = vector.shape_cast %12 : vector<16x32xf32> to vector<2x8x32xf32>
    %15 = vector.shape_cast %13 : vector<8x32xf32> to vector<1x8x32xf32>
    %16 = vector.broadcast %15 : vector<1x8x32xf32> to vector<2x8x32xf32>
    %17 = arith.addf %14, %16 : vector<2x8x32xf32>
    %18 = vector.shape_cast %17 : vector<2x8x32xf32> to vector<16x32xf32>
    %c80 = arith.constant 80 : index
    %c0_4 = arith.constant 0 : index
    %19 = vector.load %arg3[%c80, %c0_4] : memref<88x32xf32, #tpu.memory_space<vmem>>, vector<1x32xf32>
    %c81 = arith.constant 81 : index
    %c0_5 = arith.constant 0 : index
    %20 = vector.load %arg3[%c81, %c0_5] : memref<88x32xf32, #tpu.memory_space<vmem>>, vector<1x32xf32>
    %cst_6 = arith.constant dense<0.000000e+00> : vector<16xf32>
    %21 = vector.multi_reduction <add>, %18, %cst_6 [1] : vector<16x32xf32> to vector<16xf32>
    %22 = vector.shape_cast %21 : vector<16xf32> to vector<16x1xf32>
    %cst_7 = arith.constant 3.200000e+01 : f32
    %23 = vector.broadcast %cst_7 : f32 to vector<16x1xf32>
    %24 = arith.divf %22, %23 : vector<16x1xf32>
    %25 = vector.broadcast %24 : vector<16x1xf32> to vector<16x32xf32>
    %26 = arith.subf %18, %25 : vector<16x32xf32>
    %27 = arith.mulf %26, %26 : vector<16x32xf32>
    %cst_8 = arith.constant dense<0.000000e+00> : vector<16xf32>
    %28 = vector.multi_reduction <add>, %27, %cst_8 [1] : vector<16x32xf32> to vector<16xf32>
    %29 = vector.shape_cast %28 : vector<16xf32> to vector<16x1xf32>
    %cst_9 = arith.constant 3.200000e+01 : f32
    %30 = vector.broadcast %cst_9 : f32 to vector<16x1xf32>
    %31 = arith.divf %29, %30 : vector<16x1xf32>
    %cst_10 = arith.constant 9.99999996E-13 : f32
    %32 = vector.broadcast %cst_10 : f32 to vector<16x1xf32>
    %33 = arith.addf %31, %32 : vector<16x1xf32>
    %34 = math.rsqrt %33 : vector<16x1xf32>
    %35 = vector.broadcast %34 : vector<16x1xf32> to vector<16x32xf32>
    %36 = arith.mulf %26, %35 : vector<16x32xf32>
    %37 = vector.broadcast %19 : vector<1x32xf32> to vector<16x32xf32>
    %38 = arith.mulf %36, %37 : vector<16x32xf32>
    %39 = vector.broadcast %20 : vector<1x32xf32> to vector<16x32xf32>
    %40 = arith.addf %38, %39 : vector<16x32xf32>
    %c0_11 = arith.constant 0 : index
    %c0_12 = arith.constant 0 : index
    %c0_13 = arith.constant 0 : index
    %41 = vector.load %arg1[%c0_11, %c0_12, %c0_13] : memref<2x1x8xf32, #tpu.memory_space<vmem>>, vector<2x1x8xf32>
    %c0_14 = arith.constant 0 : index
    %c0_15 = arith.constant 0 : index
    %c0_16 = arith.constant 0 : index
    %42 = vector.load %arg4[%c0_14, %c0_15, %c0_16] : memref<2x160x96xbf16, #tpu.memory_space<vmem>>, vector<1x160x96xbf16>
    %43 = vector.shape_cast %42 : vector<1x160x96xbf16> to vector<160x96xbf16>
    %c0_17 = arith.constant 0 : index
    %c0_18 = arith.constant 0 : index
    %c0_19 = arith.constant 0 : index
    %44 = vector.load %arg5[%c0_17, %c0_18, %c0_19] : memref<2x8x96xf32, #tpu.memory_space<vmem>>, vector<1x8x96xf32>
    %45 = vector.shape_cast %44 : vector<1x8x96xf32> to vector<8x96xf32>
    %46 = vector.extract_strided_slice %43 {offsets = [0, 0], sizes = [32, 96], strides = [1, 1]} : vector<160x96xbf16> to vector<32x96xbf16>
    %47 = vector.extract_strided_slice %43 {offsets = [32, 0], sizes = [32, 32], strides = [1, 1]} : vector<160x96xbf16> to vector<32x32xbf16>
    %48 = vector.extract_strided_slice %43 {offsets = [64, 0], sizes = [32, 64], strides = [1, 1]} : vector<160x96xbf16> to vector<32x64xbf16>
    %49 = vector.extract_strided_slice %43 {offsets = [96, 0], sizes = [64, 32], strides = [1, 1]} : vector<160x96xbf16> to vector<64x32xbf16>
    %50 = vector.extract_strided_slice %45 {offsets = [0, 0], sizes = [1, 96], strides = [1, 1]} : vector<8x96xf32> to vector<1x96xf32>
    %51 = vector.extract_strided_slice %45 {offsets = [1, 0], sizes = [1, 32], strides = [1, 1]} : vector<8x96xf32> to vector<1x32xf32>
    %52 = vector.extract_strided_slice %45 {offsets = [2, 0], sizes = [1, 32], strides = [1, 1]} : vector<8x96xf32> to vector<1x32xf32>
    %53 = vector.extract_strided_slice %45 {offsets = [3, 0], sizes = [1, 32], strides = [1, 1]} : vector<8x96xf32> to vector<1x32xf32>
    %54 = vector.extract_strided_slice %45 {offsets = [4, 0], sizes = [1, 64], strides = [1, 1]} : vector<8x96xf32> to vector<1x64xf32>
    %55 = vector.extract_strided_slice %45 {offsets = [5, 0], sizes = [1, 32], strides = [1, 1]} : vector<8x96xf32> to vector<1x32xf32>
    %56 = vector.extract_strided_slice %45 {offsets = [6, 0], sizes = [1, 32], strides = [1, 1]} : vector<8x96xf32> to vector<1x32xf32>
    %57 = vector.extract_strided_slice %45 {offsets = [7, 0], sizes = [1, 32], strides = [1, 1]} : vector<8x96xf32> to vector<1x32xf32>
    %58 = arith.truncf %40 : vector<16x32xf32> to vector<16x32xbf16>
    %cst_20 = arith.constant dense<0.000000e+00> : vector<16x96xf32>
    %59 = tpu.matmul %58, %46, %cst_20 {dimension_numbers = #tpu.dot_dimension_numbers<[1], [0], [0], [1], [0, 0, 1, 1], [], []>} : vector<16x32xbf16>, vector<32x96xbf16>, vector<16x96xf32> -> vector<16x96xf32>
    %60 = vector.broadcast %50 : vector<1x96xf32> to vector<16x96xf32>
    %61 = arith.addf %59, %60 : vector<16x96xf32>
    %62 = vector.extract_strided_slice %61 {offsets = [0, 0], sizes = [16, 8], strides = [1, 1]} : vector<16x96xf32> to vector<16x8xf32>
    %63 = vector.shape_cast %62 : vector<16x8xf32> to vector<2x8x8xf32>
    %64 = vector.extract_strided_slice %61 {offsets = [0, 32], sizes = [16, 8], strides = [1, 1]} : vector<16x96xf32> to vector<16x8xf32>
    %65 = vector.shape_cast %64 : vector<16x8xf32> to vector<2x8x8xf32>
    %66 = vector.extract_strided_slice %61 {offsets = [0, 64], sizes = [16, 8], strides = [1, 1]} : vector<16x96xf32> to vector<16x8xf32>
    %67 = vector.shape_cast %66 : vector<16x8xf32> to vector<2x8x8xf32>
    %68 = arith.truncf %63 : vector<2x8x8xf32> to vector<2x8x8xbf16>
    %69 = arith.truncf %65 : vector<2x8x8xf32> to vector<2x8x8xbf16>
    "tpu.trace_start"() <{level = 10 : i32, message = "bqd,bkd->bqk"}> : () -> ()
    %cst_21 = arith.constant dense<0.000000e+00> : vector<2x8x8xf32>
    %70 = tpu.matmul %68, %69, %cst_21 {dimension_numbers = #tpu.dot_dimension_numbers<[2], [2], [1], [1], [0, 0, 0, 1, 1, 1], [0], [0]>} : vector<2x8x8xbf16>, vector<2x8x8xbf16>, vector<2x8x8xf32> -> vector<2x8x8xf32>
    "tpu.trace_stop"() : () -> ()
    %cst_22 = arith.constant 0.353553385 : f32
    %71 = vector.broadcast %cst_22 : f32 to vector<2x8x8xf32>
    %72 = arith.mulf %70, %71 : vector<2x8x8xf32>
    %73 = vector.broadcast %41 : vector<2x1x8xf32> to vector<2x8x8xf32>
    %74 = arith.addf %72, %73 : vector<2x8x8xf32>
    %cst_23 = arith.constant dense<0xFF800000> : vector<2x8xf32>
    %75 = vector.multi_reduction <maximumf>, %74, %cst_23 [2] : vector<2x8x8xf32> to vector<2x8xf32>
    %76 = vector.shape_cast %75 : vector<2x8xf32> to vector<2x8x1xf32>
    %77 = vector.broadcast %76 : vector<2x8x1xf32> to vector<2x8x8xf32>
    %78 = arith.subf %74, %77 : vector<2x8x8xf32>
    %79 = math.exp %78 : vector<2x8x8xf32>
    %cst_24 = arith.constant dense<0.000000e+00> : vector<2x8xf32>
    %80 = vector.multi_reduction <add>, %79, %cst_24 [2] : vector<2x8x8xf32> to vector<2x8xf32>
    %81 = vector.shape_cast %80 : vector<2x8xf32> to vector<2x8x1xf32>
    %82 = tpu.reciprocal %81 {approx = true} : vector<2x8x1xf32> -> vector<2x8x1xf32>
    %83 = vector.broadcast %82 : vector<2x8x1xf32> to vector<2x8x8xf32>
    %84 = arith.mulf %79, %83 : vector<2x8x8xf32>
    %85 = arith.truncf %84 : vector<2x8x8xf32> to vector<2x8x8xbf16>
    %86 = arith.truncf %67 : vector<2x8x8xf32> to vector<2x8x8xbf16>
    "tpu.trace_start"() <{level = 10 : i32, message = "bqk,bkd->bqd"}> : () -> ()
    %cst_25 = arith.constant dense<0.000000e+00> : vector<2x8x8xf32>
    %87 = tpu.matmul %85, %86, %cst_25 {dimension_numbers = #tpu.dot_dimension_numbers<[2], [1], [1], [2], [0, 0, 0, 1, 1, 2], [0], [0]>} : vector<2x8x8xbf16>, vector<2x8x8xbf16>, vector<2x8x8xf32> -> vector<2x8x8xf32>
    "tpu.trace_stop"() : () -> ()
    %88 = vector.shape_cast %87 : vector<2x8x8xf32> to vector<16x8xf32>
    %89 = vector.extract_strided_slice %61 {offsets = [0, 8], sizes = [16, 8], strides = [1, 1]} : vector<16x96xf32> to vector<16x8xf32>
    %90 = vector.shape_cast %89 : vector<16x8xf32> to vector<2x8x8xf32>
    %91 = vector.extract_strided_slice %61 {offsets = [0, 40], sizes = [16, 8], strides = [1, 1]} : vector<16x96xf32> to vector<16x8xf32>
    %92 = vector.shape_cast %91 : vector<16x8xf32> to vector<2x8x8xf32>
    %93 = vector.extract_strided_slice %61 {offsets = [0, 72], sizes = [16, 8], strides = [1, 1]} : vector<16x96xf32> to vector<16x8xf32>
    %94 = vector.shape_cast %93 : vector<16x8xf32> to vector<2x8x8xf32>
    %95 = arith.truncf %90 : vector<2x8x8xf32> to vector<2x8x8xbf16>
    %96 = arith.truncf %92 : vector<2x8x8xf32> to vector<2x8x8xbf16>
    "tpu.trace_start"() <{level = 10 : i32, message = "bqd,bkd->bqk"}> : () -> ()
    %cst_26 = arith.constant dense<0.000000e+00> : vector<2x8x8xf32>
    %97 = tpu.matmul %95, %96, %cst_26 {dimension_numbers = #tpu.dot_dimension_numbers<[2], [2], [1], [1], [0, 0, 0, 1, 1, 1], [0], [0]>} : vector<2x8x8xbf16>, vector<2x8x8xbf16>, vector<2x8x8xf32> -> vector<2x8x8xf32>
    "tpu.trace_stop"() : () -> ()
    %cst_27 = arith.constant 0.353553385 : f32
    %98 = vector.broadcast %cst_27 : f32 to vector<2x8x8xf32>
    %99 = arith.mulf %97, %98 : vector<2x8x8xf32>
    %100 = vector.broadcast %41 : vector<2x1x8xf32> to vector<2x8x8xf32>
    %101 = arith.addf %99, %100 : vector<2x8x8xf32>
    %cst_28 = arith.constant dense<0xFF800000> : vector<2x8xf32>
    %102 = vector.multi_reduction <maximumf>, %101, %cst_28 [2] : vector<2x8x8xf32> to vector<2x8xf32>
    %103 = vector.shape_cast %102 : vector<2x8xf32> to vector<2x8x1xf32>
    %104 = vector.broadcast %103 : vector<2x8x1xf32> to vector<2x8x8xf32>
    %105 = arith.subf %101, %104 : vector<2x8x8xf32>
    %106 = math.exp %105 : vector<2x8x8xf32>
    %cst_29 = arith.constant dense<0.000000e+00> : vector<2x8xf32>
    %107 = vector.multi_reduction <add>, %106, %cst_29 [2] : vector<2x8x8xf32> to vector<2x8xf32>
    %108 = vector.shape_cast %107 : vector<2x8xf32> to vector<2x8x1xf32>
    %109 = tpu.reciprocal %108 {approx = true} : vector<2x8x1xf32> -> vector<2x8x1xf32>
    %110 = vector.broadcast %109 : vector<2x8x1xf32> to vector<2x8x8xf32>
    %111 = arith.mulf %106, %110 : vector<2x8x8xf32>
    %112 = arith.truncf %111 : vector<2x8x8xf32> to vector<2x8x8xbf16>
    %113 = arith.truncf %94 : vector<2x8x8xf32> to vector<2x8x8xbf16>
    "tpu.trace_start"() <{level = 10 : i32, message = "bqk,bkd->bqd"}> : () -> ()
    %cst_30 = arith.constant dense<0.000000e+00> : vector<2x8x8xf32>
    %114 = tpu.matmul %112, %113, %cst_30 {dimension_numbers = #tpu.dot_dimension_numbers<[2], [1], [1], [2], [0, 0, 0, 1, 1, 2], [0], [0]>} : vector<2x8x8xbf16>, vector<2x8x8xbf16>, vector<2x8x8xf32> -> vector<2x8x8xf32>
    "tpu.trace_stop"() : () -> ()
    %115 = vector.shape_cast %114 : vector<2x8x8xf32> to vector<16x8xf32>
    %116 = vector.extract_strided_slice %61 {offsets = [0, 16], sizes = [16, 8], strides = [1, 1]} : vector<16x96xf32> to vector<16x8xf32>
    %117 = vector.shape_cast %116 : vector<16x8xf32> to vector<2x8x8xf32>
    %118 = vector.extract_strided_slice %61 {offsets = [0, 48], sizes = [16, 8], strides = [1, 1]} : vector<16x96xf32> to vector<16x8xf32>
    %119 = vector.shape_cast %118 : vector<16x8xf32> to vector<2x8x8xf32>
    %120 = vector.extract_strided_slice %61 {offsets = [0, 80], sizes = [16, 8], strides = [1, 1]} : vector<16x96xf32> to vector<16x8xf32>
    %121 = vector.shape_cast %120 : vector<16x8xf32> to vector<2x8x8xf32>
    %122 = arith.truncf %117 : vector<2x8x8xf32> to vector<2x8x8xbf16>
    %123 = arith.truncf %119 : vector<2x8x8xf32> to vector<2x8x8xbf16>
    "tpu.trace_start"() <{level = 10 : i32, message = "bqd,bkd->bqk"}> : () -> ()
    %cst_31 = arith.constant dense<0.000000e+00> : vector<2x8x8xf32>
    %124 = tpu.matmul %122, %123, %cst_31 {dimension_numbers = #tpu.dot_dimension_numbers<[2], [2], [1], [1], [0, 0, 0, 1, 1, 1], [0], [0]>} : vector<2x8x8xbf16>, vector<2x8x8xbf16>, vector<2x8x8xf32> -> vector<2x8x8xf32>
    "tpu.trace_stop"() : () -> ()
    %cst_32 = arith.constant 0.353553385 : f32
    %125 = vector.broadcast %cst_32 : f32 to vector<2x8x8xf32>
    %126 = arith.mulf %124, %125 : vector<2x8x8xf32>
    %127 = vector.broadcast %41 : vector<2x1x8xf32> to vector<2x8x8xf32>
    %128 = arith.addf %126, %127 : vector<2x8x8xf32>
    %cst_33 = arith.constant dense<0xFF800000> : vector<2x8xf32>
    %129 = vector.multi_reduction <maximumf>, %128, %cst_33 [2] : vector<2x8x8xf32> to vector<2x8xf32>
    %130 = vector.shape_cast %129 : vector<2x8xf32> to vector<2x8x1xf32>
    %131 = vector.broadcast %130 : vector<2x8x1xf32> to vector<2x8x8xf32>
    %132 = arith.subf %128, %131 : vector<2x8x8xf32>
    %133 = math.exp %132 : vector<2x8x8xf32>
    %cst_34 = arith.constant dense<0.000000e+00> : vector<2x8xf32>
    %134 = vector.multi_reduction <add>, %133, %cst_34 [2] : vector<2x8x8xf32> to vector<2x8xf32>
    %135 = vector.shape_cast %134 : vector<2x8xf32> to vector<2x8x1xf32>
    %136 = tpu.reciprocal %135 {approx = true} : vector<2x8x1xf32> -> vector<2x8x1xf32>
    %137 = vector.broadcast %136 : vector<2x8x1xf32> to vector<2x8x8xf32>
    %138 = arith.mulf %133, %137 : vector<2x8x8xf32>
    %139 = arith.truncf %138 : vector<2x8x8xf32> to vector<2x8x8xbf16>
    %140 = arith.truncf %121 : vector<2x8x8xf32> to vector<2x8x8xbf16>
    "tpu.trace_start"() <{level = 10 : i32, message = "bqk,bkd->bqd"}> : () -> ()
    %cst_35 = arith.constant dense<0.000000e+00> : vector<2x8x8xf32>
    %141 = tpu.matmul %139, %140, %cst_35 {dimension_numbers = #tpu.dot_dimension_numbers<[2], [1], [1], [2], [0, 0, 0, 1, 1, 2], [0], [0]>} : vector<2x8x8xbf16>, vector<2x8x8xbf16>, vector<2x8x8xf32> -> vector<2x8x8xf32>
    "tpu.trace_stop"() : () -> ()
    %142 = vector.shape_cast %141 : vector<2x8x8xf32> to vector<16x8xf32>
    %143 = vector.extract_strided_slice %61 {offsets = [0, 24], sizes = [16, 8], strides = [1, 1]} : vector<16x96xf32> to vector<16x8xf32>
    %144 = vector.shape_cast %143 : vector<16x8xf32> to vector<2x8x8xf32>
    %145 = vector.extract_strided_slice %61 {offsets = [0, 56], sizes = [16, 8], strides = [1, 1]} : vector<16x96xf32> to vector<16x8xf32>
    %146 = vector.shape_cast %145 : vector<16x8xf32> to vector<2x8x8xf32>
    %147 = vector.extract_strided_slice %61 {offsets = [0, 88], sizes = [16, 8], strides = [1, 1]} : vector<16x96xf32> to vector<16x8xf32>
    %148 = vector.shape_cast %147 : vector<16x8xf32> to vector<2x8x8xf32>
    %149 = arith.truncf %144 : vector<2x8x8xf32> to vector<2x8x8xbf16>
    %150 = arith.truncf %146 : vector<2x8x8xf32> to vector<2x8x8xbf16>
    "tpu.trace_start"() <{level = 10 : i32, message = "bqd,bkd->bqk"}> : () -> ()
    %cst_36 = arith.constant dense<0.000000e+00> : vector<2x8x8xf32>
    %151 = tpu.matmul %149, %150, %cst_36 {dimension_numbers = #tpu.dot_dimension_numbers<[2], [2], [1], [1], [0, 0, 0, 1, 1, 1], [0], [0]>} : vector<2x8x8xbf16>, vector<2x8x8xbf16>, vector<2x8x8xf32> -> vector<2x8x8xf32>
    "tpu.trace_stop"() : () -> ()
    %cst_37 = arith.constant 0.353553385 : f32
    %152 = vector.broadcast %cst_37 : f32 to vector<2x8x8xf32>
    %153 = arith.mulf %151, %152 : vector<2x8x8xf32>
    %154 = vector.broadcast %41 : vector<2x1x8xf32> to vector<2x8x8xf32>
    %155 = arith.addf %153, %154 : vector<2x8x8xf32>
    %cst_38 = arith.constant dense<0xFF800000> : vector<2x8xf32>
    %156 = vector.multi_reduction <maximumf>, %155, %cst_38 [2] : vector<2x8x8xf32> to vector<2x8xf32>
    %157 = vector.shape_cast %156 : vector<2x8xf32> to vector<2x8x1xf32>
    %158 = vector.broadcast %157 : vector<2x8x1xf32> to vector<2x8x8xf32>
    %159 = arith.subf %155, %158 : vector<2x8x8xf32>
    %160 = math.exp %159 : vector<2x8x8xf32>
    %cst_39 = arith.constant dense<0.000000e+00> : vector<2x8xf32>
    %161 = vector.multi_reduction <add>, %160, %cst_39 [2] : vector<2x8x8xf32> to vector<2x8xf32>
    %162 = vector.shape_cast %161 : vector<2x8xf32> to vector<2x8x1xf32>
    %163 = tpu.reciprocal %162 {approx = true} : vector<2x8x1xf32> -> vector<2x8x1xf32>
    %164 = vector.broadcast %163 : vector<2x8x1xf32> to vector<2x8x8xf32>
    %165 = arith.mulf %160, %164 : vector<2x8x8xf32>
    %166 = arith.truncf %165 : vector<2x8x8xf32> to vector<2x8x8xbf16>
    %167 = arith.truncf %148 : vector<2x8x8xf32> to vector<2x8x8xbf16>
    "tpu.trace_start"() <{level = 10 : i32, message = "bqk,bkd->bqd"}> : () -> ()
    %cst_40 = arith.constant dense<0.000000e+00> : vector<2x8x8xf32>
    %168 = tpu.matmul %166, %167, %cst_40 {dimension_numbers = #tpu.dot_dimension_numbers<[2], [1], [1], [2], [0, 0, 0, 1, 1, 2], [0], [0]>} : vector<2x8x8xbf16>, vector<2x8x8xbf16>, vector<2x8x8xf32> -> vector<2x8x8xf32>
    "tpu.trace_stop"() : () -> ()
    %169 = vector.shape_cast %168 : vector<2x8x8xf32> to vector<16x8xf32>
    %170 = tpu.concatenate %88, %115, %142, %169 in 1 : vector<16x8xf32>, vector<16x8xf32>, vector<16x8xf32>, vector<16x8xf32> -> vector<16x32xf32>
    %171 = arith.truncf %170 : vector<16x32xf32> to vector<16x32xbf16>
    %cst_41 = arith.constant dense<0.000000e+00> : vector<16x32xf32>
    %172 = tpu.matmul %171, %47, %cst_41 {dimension_numbers = #tpu.dot_dimension_numbers<[1], [0], [0], [1], [0, 0, 1, 1], [], []>} : vector<16x32xbf16>, vector<32x32xbf16>, vector<16x32xf32> -> vector<16x32xf32>
    %173 = vector.broadcast %51 : vector<1x32xf32> to vector<16x32xf32>
    %174 = arith.addf %172, %173 : vector<16x32xf32>
    %175 = arith.addf %40, %174 : vector<16x32xf32>
    %cst_42 = arith.constant dense<0.000000e+00> : vector<16xf32>
    %176 = vector.multi_reduction <add>, %175, %cst_42 [1] : vector<16x32xf32> to vector<16xf32>
    %177 = vector.shape_cast %176 : vector<16xf32> to vector<16x1xf32>
    %cst_43 = arith.constant 3.200000e+01 : f32
    %178 = vector.broadcast %cst_43 : f32 to vector<16x1xf32>
    %179 = arith.divf %177, %178 : vector<16x1xf32>
    %180 = vector.broadcast %179 : vector<16x1xf32> to vector<16x32xf32>
    %181 = arith.subf %175, %180 : vector<16x32xf32>
    %182 = arith.mulf %181, %181 : vector<16x32xf32>
    %cst_44 = arith.constant dense<0.000000e+00> : vector<16xf32>
    %183 = vector.multi_reduction <add>, %182, %cst_44 [1] : vector<16x32xf32> to vector<16xf32>
    %184 = vector.shape_cast %183 : vector<16xf32> to vector<16x1xf32>
    %cst_45 = arith.constant 3.200000e+01 : f32
    %185 = vector.broadcast %cst_45 : f32 to vector<16x1xf32>
    %186 = arith.divf %184, %185 : vector<16x1xf32>
    %cst_46 = arith.constant 9.99999996E-13 : f32
    %187 = vector.broadcast %cst_46 : f32 to vector<16x1xf32>
    %188 = arith.addf %186, %187 : vector<16x1xf32>
    %189 = math.rsqrt %188 : vector<16x1xf32>
    %190 = vector.broadcast %189 : vector<16x1xf32> to vector<16x32xf32>
    %191 = arith.mulf %181, %190 : vector<16x32xf32>
    %192 = vector.broadcast %52 : vector<1x32xf32> to vector<16x32xf32>
    %193 = arith.mulf %191, %192 : vector<16x32xf32>
    %194 = vector.broadcast %53 : vector<1x32xf32> to vector<16x32xf32>
    %195 = arith.addf %193, %194 : vector<16x32xf32>
    %196 = arith.truncf %195 : vector<16x32xf32> to vector<16x32xbf16>
    %cst_47 = arith.constant dense<0.000000e+00> : vector<16x64xf32>
    %197 = tpu.matmul %196, %48, %cst_47 {dimension_numbers = #tpu.dot_dimension_numbers<[1], [0], [0], [1], [0, 0, 1, 1], [], []>} : vector<16x32xbf16>, vector<32x64xbf16>, vector<16x64xf32> -> vector<16x64xf32>
    %198 = vector.broadcast %54 : vector<1x64xf32> to vector<16x64xf32>
    %199 = arith.addf %197, %198 : vector<16x64xf32>
    %cst_48 = arith.constant 5.000000e-01 : f32
    %200 = vector.broadcast %cst_48 : f32 to vector<16x64xf32>
    %201 = arith.mulf %200, %199 : vector<16x64xf32>
    %cst_49 = arith.constant 4.471500e-02 : f32
    %202 = vector.broadcast %cst_49 : f32 to vector<16x64xf32>
    %203 = arith.mulf %202, %199 : vector<16x64xf32>
    %204 = arith.mulf %203, %199 : vector<16x64xf32>
    %205 = arith.mulf %204, %199 : vector<16x64xf32>
    %206 = arith.addf %199, %205 : vector<16x64xf32>
    %cst_50 = arith.constant 0.797884583 : f32
    %207 = vector.broadcast %cst_50 : f32 to vector<16x64xf32>
    %208 = arith.mulf %207, %206 : vector<16x64xf32>
    %209 = math.tanh %208 : vector<16x64xf32>
    %cst_51 = arith.constant 1.000000e+00 : f32
    %210 = vector.broadcast %cst_51 : f32 to vector<16x64xf32>
    %211 = arith.addf %210, %209 : vector<16x64xf32>
    %212 = arith.mulf %201, %211 : vector<16x64xf32>
    %213 = arith.truncf %212 : vector<16x64xf32> to vector<16x64xbf16>
    %cst_52 = arith.constant dense<0.000000e+00> : vector<16x32xf32>
    %214 = tpu.matmul %213, %49, %cst_52 {dimension_numbers = #tpu.dot_dimension_numbers<[1], [0], [0], [1], [0, 0, 1, 1], [], []>} : vector<16x64xbf16>, vector<64x32xbf16>, vector<16x32xf32> -> vector<16x32xf32>
    %215 = vector.broadcast %55 : vector<1x32xf32> to vector<16x32xf32>
    %216 = arith.addf %214, %215 : vector<16x32xf32>
    %217 = arith.addf %195, %216 : vector<16x32xf32>
    %cst_53 = arith.constant dense<0.000000e+00> : vector<16xf32>
    %218 = vector.multi_reduction <add>, %217, %cst_53 [1] : vector<16x32xf32> to vector<16xf32>
    %219 = vector.shape_cast %218 : vector<16xf32> to vector<16x1xf32>
    %cst_54 = arith.constant 3.200000e+01 : f32
    %220 = vector.broadcast %cst_54 : f32 to vector<16x1xf32>
    %221 = arith.divf %219, %220 : vector<16x1xf32>
    %222 = vector.broadcast %221 : vector<16x1xf32> to vector<16x32xf32>
    %223 = arith.subf %217, %222 : vector<16x32xf32>
    %224 = arith.mulf %223, %223 : vector<16x32xf32>
    %cst_55 = arith.constant dense<0.000000e+00> : vector<16xf32>
    %225 = vector.multi_reduction <add>, %224, %cst_55 [1] : vector<16x32xf32> to vector<16xf32>
    %226 = vector.shape_cast %225 : vector<16xf32> to vector<16x1xf32>
    %cst_56 = arith.constant 3.200000e+01 : f32
    %227 = vector.broadcast %cst_56 : f32 to vector<16x1xf32>
    %228 = arith.divf %226, %227 : vector<16x1xf32>
    %cst_57 = arith.constant 9.99999996E-13 : f32
    %229 = vector.broadcast %cst_57 : f32 to vector<16x1xf32>
    %230 = arith.addf %228, %229 : vector<16x1xf32>
    %231 = math.rsqrt %230 : vector<16x1xf32>
    %232 = vector.broadcast %231 : vector<16x1xf32> to vector<16x32xf32>
    %233 = arith.mulf %223, %232 : vector<16x32xf32>
    %234 = vector.broadcast %56 : vector<1x32xf32> to vector<16x32xf32>
    %235 = arith.mulf %233, %234 : vector<16x32xf32>
    %236 = vector.broadcast %57 : vector<1x32xf32> to vector<16x32xf32>
    %237 = arith.addf %235, %236 : vector<16x32xf32>
    %c1 = arith.constant 1 : index
    %c0_58 = arith.constant 0 : index
    %c0_59 = arith.constant 0 : index
    %238 = vector.load %arg4[%c1, %c0_58, %c0_59] : memref<2x160x96xbf16, #tpu.memory_space<vmem>>, vector<1x160x96xbf16>
    %239 = vector.shape_cast %238 : vector<1x160x96xbf16> to vector<160x96xbf16>
    %c1_60 = arith.constant 1 : index
    %c0_61 = arith.constant 0 : index
    %c0_62 = arith.constant 0 : index
    %240 = vector.load %arg5[%c1_60, %c0_61, %c0_62] : memref<2x8x96xf32, #tpu.memory_space<vmem>>, vector<1x8x96xf32>
    %241 = vector.shape_cast %240 : vector<1x8x96xf32> to vector<8x96xf32>
    %242 = vector.extract_strided_slice %239 {offsets = [0, 0], sizes = [32, 96], strides = [1, 1]} : vector<160x96xbf16> to vector<32x96xbf16>
    %243 = vector.extract_strided_slice %239 {offsets = [32, 0], sizes = [32, 32], strides = [1, 1]} : vector<160x96xbf16> to vector<32x32xbf16>
    %244 = vector.extract_strided_slice %239 {offsets = [64, 0], sizes = [32, 64], strides = [1, 1]} : vector<160x96xbf16> to vector<32x64xbf16>
    %245 = vector.extract_strided_slice %239 {offsets = [96, 0], sizes = [64, 32], strides = [1, 1]} : vector<160x96xbf16> to vector<64x32xbf16>
    %246 = vector.extract_strided_slice %241 {offsets = [0, 0], sizes = [1, 96], strides = [1, 1]} : vector<8x96xf32> to vector<1x96xf32>
    %247 = vector.extract_strided_slice %241 {offsets = [1, 0], sizes = [1, 32], strides = [1, 1]} : vector<8x96xf32> to vector<1x32xf32>
    %248 = vector.extract_strided_slice %241 {offsets = [2, 0], sizes = [1, 32], strides = [1, 1]} : vector<8x96xf32> to vector<1x32xf32>
    %249 = vector.extract_strided_slice %241 {offsets = [3, 0], sizes = [1, 32], strides = [1, 1]} : vector<8x96xf32> to vector<1x32xf32>
    %250 = vector.extract_strided_slice %241 {offsets = [4, 0], sizes = [1, 64], strides = [1, 1]} : vector<8x96xf32> to vector<1x64xf32>
    %251 = vector.extract_strided_slice %241 {offsets = [5, 0], sizes = [1, 32], strides = [1, 1]} : vector<8x96xf32> to vector<1x32xf32>
    %252 = vector.extract_strided_slice %241 {offsets = [6, 0], sizes = [1, 32], strides = [1, 1]} : vector<8x96xf32> to vector<1x32xf32>
    %253 = vector.extract_strided_slice %241 {offsets = [7, 0], sizes = [1, 32], strides = [1, 1]} : vector<8x96xf32> to vector<1x32xf32>
    %254 = arith.truncf %237 : vector<16x32xf32> to vector<16x32xbf16>
    %cst_63 = arith.constant dense<0.000000e+00> : vector<16x96xf32>
    %255 = tpu.matmul %254, %242, %cst_63 {dimension_numbers = #tpu.dot_dimension_numbers<[1], [0], [0], [1], [0, 0, 1, 1], [], []>} : vector<16x32xbf16>, vector<32x96xbf16>, vector<16x96xf32> -> vector<16x96xf32>
    %256 = vector.broadcast %246 : vector<1x96xf32> to vector<16x96xf32>
    %257 = arith.addf %255, %256 : vector<16x96xf32>
    %258 = vector.extract_strided_slice %257 {offsets = [0, 0], sizes = [16, 8], strides = [1, 1]} : vector<16x96xf32> to vector<16x8xf32>
    %259 = vector.shape_cast %258 : vector<16x8xf32> to vector<2x8x8xf32>
    %260 = vector.extract_strided_slice %257 {offsets = [0, 32], sizes = [16, 8], strides = [1, 1]} : vector<16x96xf32> to vector<16x8xf32>
    %261 = vector.shape_cast %260 : vector<16x8xf32> to vector<2x8x8xf32>
    %262 = vector.extract_strided_slice %257 {offsets = [0, 64], sizes = [16, 8], strides = [1, 1]} : vector<16x96xf32> to vector<16x8xf32>
    %263 = vector.shape_cast %262 : vector<16x8xf32> to vector<2x8x8xf32>
    %264 = arith.truncf %259 : vector<2x8x8xf32> to vector<2x8x8xbf16>
    %265 = arith.truncf %261 : vector<2x8x8xf32> to vector<2x8x8xbf16>
    "tpu.trace_start"() <{level = 10 : i32, message = "bqd,bkd->bqk"}> : () -> ()
    %cst_64 = arith.constant dense<0.000000e+00> : vector<2x8x8xf32>
    %266 = tpu.matmul %264, %265, %cst_64 {dimension_numbers = #tpu.dot_dimension_numbers<[2], [2], [1], [1], [0, 0, 0, 1, 1, 1], [0], [0]>} : vector<2x8x8xbf16>, vector<2x8x8xbf16>, vector<2x8x8xf32> -> vector<2x8x8xf32>
    "tpu.trace_stop"() : () -> ()
    %cst_65 = arith.constant 0.353553385 : f32
    %267 = vector.broadcast %cst_65 : f32 to vector<2x8x8xf32>
    %268 = arith.mulf %266, %267 : vector<2x8x8xf32>
    %269 = vector.broadcast %41 : vector<2x1x8xf32> to vector<2x8x8xf32>
    %270 = arith.addf %268, %269 : vector<2x8x8xf32>
    %cst_66 = arith.constant dense<0xFF800000> : vector<2x8xf32>
    %271 = vector.multi_reduction <maximumf>, %270, %cst_66 [2] : vector<2x8x8xf32> to vector<2x8xf32>
    %272 = vector.shape_cast %271 : vector<2x8xf32> to vector<2x8x1xf32>
    %273 = vector.broadcast %272 : vector<2x8x1xf32> to vector<2x8x8xf32>
    %274 = arith.subf %270, %273 : vector<2x8x8xf32>
    %275 = math.exp %274 : vector<2x8x8xf32>
    %cst_67 = arith.constant dense<0.000000e+00> : vector<2x8xf32>
    %276 = vector.multi_reduction <add>, %275, %cst_67 [2] : vector<2x8x8xf32> to vector<2x8xf32>
    %277 = vector.shape_cast %276 : vector<2x8xf32> to vector<2x8x1xf32>
    %278 = tpu.reciprocal %277 {approx = true} : vector<2x8x1xf32> -> vector<2x8x1xf32>
    %279 = vector.broadcast %278 : vector<2x8x1xf32> to vector<2x8x8xf32>
    %280 = arith.mulf %275, %279 : vector<2x8x8xf32>
    %281 = arith.truncf %280 : vector<2x8x8xf32> to vector<2x8x8xbf16>
    %282 = arith.truncf %263 : vector<2x8x8xf32> to vector<2x8x8xbf16>
    "tpu.trace_start"() <{level = 10 : i32, message = "bqk,bkd->bqd"}> : () -> ()
    %cst_68 = arith.constant dense<0.000000e+00> : vector<2x8x8xf32>
    %283 = tpu.matmul %281, %282, %cst_68 {dimension_numbers = #tpu.dot_dimension_numbers<[2], [1], [1], [2], [0, 0, 0, 1, 1, 2], [0], [0]>} : vector<2x8x8xbf16>, vector<2x8x8xbf16>, vector<2x8x8xf32> -> vector<2x8x8xf32>
    "tpu.trace_stop"() : () -> ()
    %284 = vector.shape_cast %283 : vector<2x8x8xf32> to vector<16x8xf32>
    %285 = vector.extract_strided_slice %257 {offsets = [0, 8], sizes = [16, 8], strides = [1, 1]} : vector<16x96xf32> to vector<16x8xf32>
    %286 = vector.shape_cast %285 : vector<16x8xf32> to vector<2x8x8xf32>
    %287 = vector.extract_strided_slice %257 {offsets = [0, 40], sizes = [16, 8], strides = [1, 1]} : vector<16x96xf32> to vector<16x8xf32>
    %288 = vector.shape_cast %287 : vector<16x8xf32> to vector<2x8x8xf32>
    %289 = vector.extract_strided_slice %257 {offsets = [0, 72], sizes = [16, 8], strides = [1, 1]} : vector<16x96xf32> to vector<16x8xf32>
    %290 = vector.shape_cast %289 : vector<16x8xf32> to vector<2x8x8xf32>
    %291 = arith.truncf %286 : vector<2x8x8xf32> to vector<2x8x8xbf16>
    %292 = arith.truncf %288 : vector<2x8x8xf32> to vector<2x8x8xbf16>
    "tpu.trace_start"() <{level = 10 : i32, message = "bqd,bkd->bqk"}> : () -> ()
    %cst_69 = arith.constant dense<0.000000e+00> : vector<2x8x8xf32>
    %293 = tpu.matmul %291, %292, %cst_69 {dimension_numbers = #tpu.dot_dimension_numbers<[2], [2], [1], [1], [0, 0, 0, 1, 1, 1], [0], [0]>} : vector<2x8x8xbf16>, vector<2x8x8xbf16>, vector<2x8x8xf32> -> vector<2x8x8xf32>
    "tpu.trace_stop"() : () -> ()
    %cst_70 = arith.constant 0.353553385 : f32
    %294 = vector.broadcast %cst_70 : f32 to vector<2x8x8xf32>
    %295 = arith.mulf %293, %294 : vector<2x8x8xf32>
    %296 = vector.broadcast %41 : vector<2x1x8xf32> to vector<2x8x8xf32>
    %297 = arith.addf %295, %296 : vector<2x8x8xf32>
    %cst_71 = arith.constant dense<0xFF800000> : vector<2x8xf32>
    %298 = vector.multi_reduction <maximumf>, %297, %cst_71 [2] : vector<2x8x8xf32> to vector<2x8xf32>
    %299 = vector.shape_cast %298 : vector<2x8xf32> to vector<2x8x1xf32>
    %300 = vector.broadcast %299 : vector<2x8x1xf32> to vector<2x8x8xf32>
    %301 = arith.subf %297, %300 : vector<2x8x8xf32>
    %302 = math.exp %301 : vector<2x8x8xf32>
    %cst_72 = arith.constant dense<0.000000e+00> : vector<2x8xf32>
    %303 = vector.multi_reduction <add>, %302, %cst_72 [2] : vector<2x8x8xf32> to vector<2x8xf32>
    %304 = vector.shape_cast %303 : vector<2x8xf32> to vector<2x8x1xf32>
    %305 = tpu.reciprocal %304 {approx = true} : vector<2x8x1xf32> -> vector<2x8x1xf32>
    %306 = vector.broadcast %305 : vector<2x8x1xf32> to vector<2x8x8xf32>
    %307 = arith.mulf %302, %306 : vector<2x8x8xf32>
    %308 = arith.truncf %307 : vector<2x8x8xf32> to vector<2x8x8xbf16>
    %309 = arith.truncf %290 : vector<2x8x8xf32> to vector<2x8x8xbf16>
    "tpu.trace_start"() <{level = 10 : i32, message = "bqk,bkd->bqd"}> : () -> ()
    %cst_73 = arith.constant dense<0.000000e+00> : vector<2x8x8xf32>
    %310 = tpu.matmul %308, %309, %cst_73 {dimension_numbers = #tpu.dot_dimension_numbers<[2], [1], [1], [2], [0, 0, 0, 1, 1, 2], [0], [0]>} : vector<2x8x8xbf16>, vector<2x8x8xbf16>, vector<2x8x8xf32> -> vector<2x8x8xf32>
    "tpu.trace_stop"() : () -> ()
    %311 = vector.shape_cast %310 : vector<2x8x8xf32> to vector<16x8xf32>
    %312 = vector.extract_strided_slice %257 {offsets = [0, 16], sizes = [16, 8], strides = [1, 1]} : vector<16x96xf32> to vector<16x8xf32>
    %313 = vector.shape_cast %312 : vector<16x8xf32> to vector<2x8x8xf32>
    %314 = vector.extract_strided_slice %257 {offsets = [0, 48], sizes = [16, 8], strides = [1, 1]} : vector<16x96xf32> to vector<16x8xf32>
    %315 = vector.shape_cast %314 : vector<16x8xf32> to vector<2x8x8xf32>
    %316 = vector.extract_strided_slice %257 {offsets = [0, 80], sizes = [16, 8], strides = [1, 1]} : vector<16x96xf32> to vector<16x8xf32>
    %317 = vector.shape_cast %316 : vector<16x8xf32> to vector<2x8x8xf32>
    %318 = arith.truncf %313 : vector<2x8x8xf32> to vector<2x8x8xbf16>
    %319 = arith.truncf %315 : vector<2x8x8xf32> to vector<2x8x8xbf16>
    "tpu.trace_start"() <{level = 10 : i32, message = "bqd,bkd->bqk"}> : () -> ()
    %cst_74 = arith.constant dense<0.000000e+00> : vector<2x8x8xf32>
    %320 = tpu.matmul %318, %319, %cst_74 {dimension_numbers = #tpu.dot_dimension_numbers<[2], [2], [1], [1], [0, 0, 0, 1, 1, 1], [0], [0]>} : vector<2x8x8xbf16>, vector<2x8x8xbf16>, vector<2x8x8xf32> -> vector<2x8x8xf32>
    "tpu.trace_stop"() : () -> ()
    %cst_75 = arith.constant 0.353553385 : f32
    %321 = vector.broadcast %cst_75 : f32 to vector<2x8x8xf32>
    %322 = arith.mulf %320, %321 : vector<2x8x8xf32>
    %323 = vector.broadcast %41 : vector<2x1x8xf32> to vector<2x8x8xf32>
    %324 = arith.addf %322, %323 : vector<2x8x8xf32>
    %cst_76 = arith.constant dense<0xFF800000> : vector<2x8xf32>
    %325 = vector.multi_reduction <maximumf>, %324, %cst_76 [2] : vector<2x8x8xf32> to vector<2x8xf32>
    %326 = vector.shape_cast %325 : vector<2x8xf32> to vector<2x8x1xf32>
    %327 = vector.broadcast %326 : vector<2x8x1xf32> to vector<2x8x8xf32>
    %328 = arith.subf %324, %327 : vector<2x8x8xf32>
    %329 = math.exp %328 : vector<2x8x8xf32>
    %cst_77 = arith.constant dense<0.000000e+00> : vector<2x8xf32>
    %330 = vector.multi_reduction <add>, %329, %cst_77 [2] : vector<2x8x8xf32> to vector<2x8xf32>
    %331 = vector.shape_cast %330 : vector<2x8xf32> to vector<2x8x1xf32>
    %332 = tpu.reciprocal %331 {approx = true} : vector<2x8x1xf32> -> vector<2x8x1xf32>
    %333 = vector.broadcast %332 : vector<2x8x1xf32> to vector<2x8x8xf32>
    %334 = arith.mulf %329, %333 : vector<2x8x8xf32>
    %335 = arith.truncf %334 : vector<2x8x8xf32> to vector<2x8x8xbf16>
    %336 = arith.truncf %317 : vector<2x8x8xf32> to vector<2x8x8xbf16>
    "tpu.trace_start"() <{level = 10 : i32, message = "bqk,bkd->bqd"}> : () -> ()
    %cst_78 = arith.constant dense<0.000000e+00> : vector<2x8x8xf32>
    %337 = tpu.matmul %335, %336, %cst_78 {dimension_numbers = #tpu.dot_dimension_numbers<[2], [1], [1], [2], [0, 0, 0, 1, 1, 2], [0], [0]>} : vector<2x8x8xbf16>, vector<2x8x8xbf16>, vector<2x8x8xf32> -> vector<2x8x8xf32>
    "tpu.trace_stop"() : () -> ()
    %338 = vector.shape_cast %337 : vector<2x8x8xf32> to vector<16x8xf32>
    %339 = vector.extract_strided_slice %257 {offsets = [0, 24], sizes = [16, 8], strides = [1, 1]} : vector<16x96xf32> to vector<16x8xf32>
    %340 = vector.shape_cast %339 : vector<16x8xf32> to vector<2x8x8xf32>
    %341 = vector.extract_strided_slice %257 {offsets = [0, 56], sizes = [16, 8], strides = [1, 1]} : vector<16x96xf32> to vector<16x8xf32>
    %342 = vector.shape_cast %341 : vector<16x8xf32> to vector<2x8x8xf32>
    %343 = vector.extract_strided_slice %257 {offsets = [0, 88], sizes = [16, 8], strides = [1, 1]} : vector<16x96xf32> to vector<16x8xf32>
    %344 = vector.shape_cast %343 : vector<16x8xf32> to vector<2x8x8xf32>
    %345 = arith.truncf %340 : vector<2x8x8xf32> to vector<2x8x8xbf16>
    %346 = arith.truncf %342 : vector<2x8x8xf32> to vector<2x8x8xbf16>
    "tpu.trace_start"() <{level = 10 : i32, message = "bqd,bkd->bqk"}> : () -> ()
    %cst_79 = arith.constant dense<0.000000e+00> : vector<2x8x8xf32>
    %347 = tpu.matmul %345, %346, %cst_79 {dimension_numbers = #tpu.dot_dimension_numbers<[2], [2], [1], [1], [0, 0, 0, 1, 1, 1], [0], [0]>} : vector<2x8x8xbf16>, vector<2x8x8xbf16>, vector<2x8x8xf32> -> vector<2x8x8xf32>
    "tpu.trace_stop"() : () -> ()
    %cst_80 = arith.constant 0.353553385 : f32
    %348 = vector.broadcast %cst_80 : f32 to vector<2x8x8xf32>
    %349 = arith.mulf %347, %348 : vector<2x8x8xf32>
    %350 = vector.broadcast %41 : vector<2x1x8xf32> to vector<2x8x8xf32>
    %351 = arith.addf %349, %350 : vector<2x8x8xf32>
    %cst_81 = arith.constant dense<0xFF800000> : vector<2x8xf32>
    %352 = vector.multi_reduction <maximumf>, %351, %cst_81 [2] : vector<2x8x8xf32> to vector<2x8xf32>
    %353 = vector.shape_cast %352 : vector<2x8xf32> to vector<2x8x1xf32>
    %354 = vector.broadcast %353 : vector<2x8x1xf32> to vector<2x8x8xf32>
    %355 = arith.subf %351, %354 : vector<2x8x8xf32>
    %356 = math.exp %355 : vector<2x8x8xf32>
    %cst_82 = arith.constant dense<0.000000e+00> : vector<2x8xf32>
    %357 = vector.multi_reduction <add>, %356, %cst_82 [2] : vector<2x8x8xf32> to vector<2x8xf32>
    %358 = vector.shape_cast %357 : vector<2x8xf32> to vector<2x8x1xf32>
    %359 = tpu.reciprocal %358 {approx = true} : vector<2x8x1xf32> -> vector<2x8x1xf32>
    %360 = vector.broadcast %359 : vector<2x8x1xf32> to vector<2x8x8xf32>
    %361 = arith.mulf %356, %360 : vector<2x8x8xf32>
    %362 = arith.truncf %361 : vector<2x8x8xf32> to vector<2x8x8xbf16>
    %363 = arith.truncf %344 : vector<2x8x8xf32> to vector<2x8x8xbf16>
    "tpu.trace_start"() <{level = 10 : i32, message = "bqk,bkd->bqd"}> : () -> ()
    %cst_83 = arith.constant dense<0.000000e+00> : vector<2x8x8xf32>
    %364 = tpu.matmul %362, %363, %cst_83 {dimension_numbers = #tpu.dot_dimension_numbers<[2], [1], [1], [2], [0, 0, 0, 1, 1, 2], [0], [0]>} : vector<2x8x8xbf16>, vector<2x8x8xbf16>, vector<2x8x8xf32> -> vector<2x8x8xf32>
    "tpu.trace_stop"() : () -> ()
    %365 = vector.shape_cast %364 : vector<2x8x8xf32> to vector<16x8xf32>
    %366 = tpu.concatenate %284, %311, %338, %365 in 1 : vector<16x8xf32>, vector<16x8xf32>, vector<16x8xf32>, vector<16x8xf32> -> vector<16x32xf32>
    %367 = arith.truncf %366 : vector<16x32xf32> to vector<16x32xbf16>
    %cst_84 = arith.constant dense<0.000000e+00> : vector<16x32xf32>
    %368 = tpu.matmul %367, %243, %cst_84 {dimension_numbers = #tpu.dot_dimension_numbers<[1], [0], [0], [1], [0, 0, 1, 1], [], []>} : vector<16x32xbf16>, vector<32x32xbf16>, vector<16x32xf32> -> vector<16x32xf32>
    %369 = vector.broadcast %247 : vector<1x32xf32> to vector<16x32xf32>
    %370 = arith.addf %368, %369 : vector<16x32xf32>
    %371 = arith.addf %237, %370 : vector<16x32xf32>
    %cst_85 = arith.constant dense<0.000000e+00> : vector<16xf32>
    %372 = vector.multi_reduction <add>, %371, %cst_85 [1] : vector<16x32xf32> to vector<16xf32>
    %373 = vector.shape_cast %372 : vector<16xf32> to vector<16x1xf32>
    %cst_86 = arith.constant 3.200000e+01 : f32
    %374 = vector.broadcast %cst_86 : f32 to vector<16x1xf32>
    %375 = arith.divf %373, %374 : vector<16x1xf32>
    %376 = vector.broadcast %375 : vector<16x1xf32> to vector<16x32xf32>
    %377 = arith.subf %371, %376 : vector<16x32xf32>
    %378 = arith.mulf %377, %377 : vector<16x32xf32>
    %cst_87 = arith.constant dense<0.000000e+00> : vector<16xf32>
    %379 = vector.multi_reduction <add>, %378, %cst_87 [1] : vector<16x32xf32> to vector<16xf32>
    %380 = vector.shape_cast %379 : vector<16xf32> to vector<16x1xf32>
    %cst_88 = arith.constant 3.200000e+01 : f32
    %381 = vector.broadcast %cst_88 : f32 to vector<16x1xf32>
    %382 = arith.divf %380, %381 : vector<16x1xf32>
    %cst_89 = arith.constant 9.99999996E-13 : f32
    %383 = vector.broadcast %cst_89 : f32 to vector<16x1xf32>
    %384 = arith.addf %382, %383 : vector<16x1xf32>
    %385 = math.rsqrt %384 : vector<16x1xf32>
    %386 = vector.broadcast %385 : vector<16x1xf32> to vector<16x32xf32>
    %387 = arith.mulf %377, %386 : vector<16x32xf32>
    %388 = vector.broadcast %248 : vector<1x32xf32> to vector<16x32xf32>
    %389 = arith.mulf %387, %388 : vector<16x32xf32>
    %390 = vector.broadcast %249 : vector<1x32xf32> to vector<16x32xf32>
    %391 = arith.addf %389, %390 : vector<16x32xf32>
    %392 = arith.truncf %391 : vector<16x32xf32> to vector<16x32xbf16>
    %cst_90 = arith.constant dense<0.000000e+00> : vector<16x64xf32>
    %393 = tpu.matmul %392, %244, %cst_90 {dimension_numbers = #tpu.dot_dimension_numbers<[1], [0], [0], [1], [0, 0, 1, 1], [], []>} : vector<16x32xbf16>, vector<32x64xbf16>, vector<16x64xf32> -> vector<16x64xf32>
    %394 = vector.broadcast %250 : vector<1x64xf32> to vector<16x64xf32>
    %395 = arith.addf %393, %394 : vector<16x64xf32>
    %cst_91 = arith.constant 5.000000e-01 : f32
    %396 = vector.broadcast %cst_91 : f32 to vector<16x64xf32>
    %397 = arith.mulf %396, %395 : vector<16x64xf32>
    %cst_92 = arith.constant 4.471500e-02 : f32
    %398 = vector.broadcast %cst_92 : f32 to vector<16x64xf32>
    %399 = arith.mulf %398, %395 : vector<16x64xf32>
    %400 = arith.mulf %399, %395 : vector<16x64xf32>
    %401 = arith.mulf %400, %395 : vector<16x64xf32>
    %402 = arith.addf %395, %401 : vector<16x64xf32>
    %cst_93 = arith.constant 0.797884583 : f32
    %403 = vector.broadcast %cst_93 : f32 to vector<16x64xf32>
    %404 = arith.mulf %403, %402 : vector<16x64xf32>
    %405 = math.tanh %404 : vector<16x64xf32>
    %cst_94 = arith.constant 1.000000e+00 : f32
    %406 = vector.broadcast %cst_94 : f32 to vector<16x64xf32>
    %407 = arith.addf %406, %405 : vector<16x64xf32>
    %408 = arith.mulf %397, %407 : vector<16x64xf32>
    %409 = arith.truncf %408 : vector<16x64xf32> to vector<16x64xbf16>
    %cst_95 = arith.constant dense<0.000000e+00> : vector<16x32xf32>
    %410 = tpu.matmul %409, %245, %cst_95 {dimension_numbers = #tpu.dot_dimension_numbers<[1], [0], [0], [1], [0, 0, 1, 1], [], []>} : vector<16x64xbf16>, vector<64x32xbf16>, vector<16x32xf32> -> vector<16x32xf32>
    %411 = vector.broadcast %251 : vector<1x32xf32> to vector<16x32xf32>
    %412 = arith.addf %410, %411 : vector<16x32xf32>
    %413 = arith.addf %391, %412 : vector<16x32xf32>
    %cst_96 = arith.constant dense<0.000000e+00> : vector<16xf32>
    %414 = vector.multi_reduction <add>, %413, %cst_96 [1] : vector<16x32xf32> to vector<16xf32>
    %415 = vector.shape_cast %414 : vector<16xf32> to vector<16x1xf32>
    %cst_97 = arith.constant 3.200000e+01 : f32
    %416 = vector.broadcast %cst_97 : f32 to vector<16x1xf32>
    %417 = arith.divf %415, %416 : vector<16x1xf32>
    %418 = vector.broadcast %417 : vector<16x1xf32> to vector<16x32xf32>
    %419 = arith.subf %413, %418 : vector<16x32xf32>
    %420 = arith.mulf %419, %419 : vector<16x32xf32>
    %cst_98 = arith.constant dense<0.000000e+00> : vector<16xf32>
    %421 = vector.multi_reduction <add>, %420, %cst_98 [1] : vector<16x32xf32> to vector<16xf32>
    %422 = vector.shape_cast %421 : vector<16xf32> to vector<16x1xf32>
    %cst_99 = arith.constant 3.200000e+01 : f32
    %423 = vector.broadcast %cst_99 : f32 to vector<16x1xf32>
    %424 = arith.divf %422, %423 : vector<16x1xf32>
    %cst_100 = arith.constant 9.99999996E-13 : f32
    %425 = vector.broadcast %cst_100 : f32 to vector<16x1xf32>
    %426 = arith.addf %424, %425 : vector<16x1xf32>
    %427 = math.rsqrt %426 : vector<16x1xf32>
    %428 = vector.broadcast %427 : vector<16x1xf32> to vector<16x32xf32>
    %429 = arith.mulf %419, %428 : vector<16x32xf32>
    %430 = vector.broadcast %252 : vector<1x32xf32> to vector<16x32xf32>
    %431 = arith.mulf %429, %430 : vector<16x32xf32>
    %432 = vector.broadcast %253 : vector<1x32xf32> to vector<16x32xf32>
    %433 = arith.addf %431, %432 : vector<16x32xf32>
    %c0_101 = arith.constant 0 : index
    %c0_102 = arith.constant 0 : index
    %c0_103 = arith.constant 0 : index
    %434 = vector.load %arg2[%c0_101, %c0_102, %c0_103] : memref<2x8x1xf32, #tpu.memory_space<vmem>>, vector<2x8x1xf32>
    %435 = vector.shape_cast %433 : vector<16x32xf32> to vector<2x8x32xf32>
    %436 = vector.broadcast %434 : vector<2x8x1xf32> to vector<2x8x32xf32>
    %437 = arith.mulf %435, %436 : vector<2x8x32xf32>
    %cst_104 = arith.constant dense<0.000000e+00> : vector<2x32xf32>
    %438 = vector.multi_reduction <add>, %437, %cst_104 [1] : vector<2x8x32xf32> to vector<2x32xf32>
    %cst_105 = arith.constant dense<0.000000e+00> : vector<2x1xf32>
    %439 = vector.multi_reduction <add>, %434, %cst_105 [1] : vector<2x8x1xf32> to vector<2x1xf32>
    %440 = vector.broadcast %439 : vector<2x1xf32> to vector<2x32xf32>
    %441 = arith.divf %438, %440 : vector<2x32xf32>
    %c0_106 = arith.constant 0 : index
    %c0_107 = arith.constant 0 : index
    %442 = vector.load %arg6[%c0_106, %c0_107] : memref<40x128xf32, #tpu.memory_space<vmem>>, vector<32x128xf32>
    %cst_108 = arith.constant dense<0.000000e+00> : vector<2x128xf32>
    %443 = tpu.matmul %441, %442, %cst_108 {dimension_numbers = #tpu.dot_dimension_numbers<[1], [0], [0], [1], [0, 0, 1, 1], [], []>} : vector<2x32xf32>, vector<32x128xf32>, vector<2x128xf32> -> vector<2x128xf32>
    %c32 = arith.constant 32 : index
    %c0_109 = arith.constant 0 : index
    %444 = vector.load %arg6[%c32, %c0_109] : memref<40x128xf32, #tpu.memory_space<vmem>>, vector<1x128xf32>
    %445 = vector.broadcast %444 : vector<1x128xf32> to vector<2x128xf32>
    %446 = arith.addf %443, %445 : vector<2x128xf32>
    %c0_110 = arith.constant 0 : index
    %c0_111 = arith.constant 0 : index
    %447 = vector.load %arg7[%c0_110, %c0_111] : memref<2x128xf32, #tpu.memory_space<vmem>>, vector<2x128xf32>
    tpu.vector_store %arg7[%c0_110, %c0_111], %446 {strides = array<i32>} : memref<2x128xf32, #tpu.memory_space<vmem>>, vector<2x128xf32>,
    return
  }
}

</mosaic_0001>

<bundles_post_ra>
// kernel: model_forward.1
= control target key start
LH: loop header
LB: loop body
LE: loop exit
PB: predicated region body
PF: predicated region fallthrough
CT: control target
= control target key end

     0   :  { %12 = vsyncpa [#allocation3], 0  ;;  %s4462_s0 = inlined_call_operand.vmem [shape: s32[16,2], index: 0, kind: input, shape index: {}]   ;;  %s4463_s1 = inlined_call_operand.vmem [shape: f32[2,1,8], index: 1, kind: input, shape index: {}]   ;;  %s4464_s2 = inlined_call_operand.vmem [shape: f32[2,8,1], index: 2, kind: input, shape index: {}]   ;;  %s4465_s3 = inlined_call_operand.vmem [shape: f32[88,32], index: 3, kind: input, shape index: {}]   ;;  %s4466_s4 = inlined_call_operand.vmem [shape: bf16[2,160,96], index: 4, kind: input, shape index: {}]   ;;  %s4467_s5 = inlined_call_operand.hbm [shape: f32[2,8,96], index: 5, kind: input, shape index: {}]   ;;  %s4468_s6 = inlined_call_operand.vmem [shape: f32[40,128], index: 6, kind: input, shape index: {}]   ;;  %s4469_s7 = inlined_call_operand.hbm [shape: f32[2,128], index: 7, kind: output, shape index: {}]  }
   0x1   :  { %13 = vsyncpa [#allocation4], 0  ;;  %s3727_s24 = smov [#allocation2]   ;;  %s3679_s28 = scalar_lea.hbm %s4467_s5, 256 }
   0x2   :  { %s29_s25 = sshll.u32 %s3727_s24, 4  ;;  %p3680_p0 = scmp.ne.s32.totalorder %s4467_s5, %s3679_s28  ;;  %s30_s25 = int_to_ptr.vmem [resolvable:$true] %s29_s25 }
   0x3   :  { %p3683_p1 = scmp.lt.u32.totalorder %s3679_s28, %s4467_s5 }
   0x5   :  { %p3685_p2 = pnand %p3683_p1, %p3680_p0 }
   0x7   :  { %3688 = shalt.err (!%p3685_p2)
}
   0x8   :  { %s3689_s10 = scalar_lea.vmem %s30_s25, 256  ;;  %p3694_p4 = scmp.lt.s32.totalorder %s30_s25, %s30_s25 }
   0x9   :  { %p3690_p3 = scmp.ne.s32.totalorder %s30_s25, %s3689_s10  ;;  %p3695_p5 = scmp.lt.s32.totalorder %s3689_s10, %s3689_s10 }
   0xb   :  { %p3696_p6 = por %p3695_p5, %p3694_p4 }
   0xd   :  { %p3697_p7 = pnand %p3696_p6, %p3690_p3 }
   0xf   :  { %3700 = shalt.err (!%p3697_p7)
}
  0x10   :  { %s3728_s11 = smov 128   ;;  %s3729_s12 = smov 8  }
  0x11   :  { %35 = dma.hbm_to_vmem [thread:$0]  %s4467_s5, 256, %s30_s25, [#allocation3], %s3728_s11, %s3728_s11, %s3729_s12  }
  0x12   :  { %3723 = dma.done.wait [#allocation3], 256  }
  0x13   :  { %3724 = vsyncadd [#allocation3], 4294967040  ;;  %v3730_v0 = vmov 0   ;;  %v43_v1 = vld [vmem:[%s4462_s0 + $0x8] sm:$0xff]  ;;  %v42_v2 = vld [vmem:[%s4462_s0] sm:$0xff]  ;;  %v3731_v11 = vmov 1   ;;  %v44_v18 = vlaneseq }
  0x14   :  { %3525 = vset.pattern.permute.xlu1 %v3730_v0  ;;  %3523 = vset.pattern.permute.xlu0 %v3730_v0  ;;  %v68_v3 = vld [vmem:[%s4465_s3] sm:$0xff]  ;;  %v69_v4 = vld [vmem:[%s4465_s3 + $0x8] sm:$0xff]  ;;  %v70_v5 = vld [vmem:[%s4465_s3 + $0x10] sm:$0xff]  ;;  %v3732_v15 = vmov 0.0   ;;  %vm77_vm5 = vcmask 588800   ;;  %vm164_vm7 = vcmask 261120  }
  0x15   :  { %50 = vperm.xlu1 %3525, %v43_v1   ;;  %47 = vperm.xlu0 %3523, %v42_v2   ;;  %v71_v6 = vld [vmem:[%s4465_s3 + $0x18] sm:$0xff]  ;;  %v3479_v7 = vpack.c.bf16 %v69_v4, %v68_v3  ;;  %v72_v8 = vld [vmem:[%s4465_s3 + $0x20] sm:$0xff]  ;;  %v73_v9 = vld [vmem:[%s4465_s3 + $0x28] sm:$0xff]  ;;  %v45_v21 = vand.u32 127, %v44_v18  ;;  %vm3733_vm8 = vmmov 0   ;;  %v3875_v62 = vshrl.u32 %v44_v18, 7 }
  0x16   :  { %v3483_v10 = vpack.c.bf16 %v71_v6, %v70_v5  ;;  %v3487_v12 = vpack.c.bf16 %v73_v9, %v72_v8  ;;  %v74_v13 = vld [vmem:[%s4465_s3 + $0x30] sm:$0xff]  ;;  %v75_v14 = vld [vmem:[%s4465_s3 + $0x38] sm:$0xff]  ;;  %3204 = vmatprep.subr.bf16.mxu1 %v3732_v15  ;;  %v76_v17 = vld [vmem:[%s4465_s3 + $0x40] sm:$0xff]  ;;  %3208 = vmatprep.mubr.msk.bf16.mxu1 %vm3733_vm8, %v3732_v15  ;;  %vm293_vm9 = vcmask 64512   ;;  %s3735_s0 = smov 64   ;;  %vm434_vm10 = vcmask 1043456  }
  0x17   :  { %3480 = vmatprep.subr.bf16.mxu0 %v3479_v7  ;;  %v3491_v16 = vpack.c.bf16 %v75_v14, %v74_v13  ;;  %v159_v26 = vld [vmem:[%s4465_s3 + $0x48] sm:$0xff]  ;;  %v3559_v43 = vld [vmem:[%s4466_s4] sm:$0xff]   ;;  %v2989_v52 = vld [vmem:[%s4465_s3 + $0x50] ss:$0 sm:$0xff]  ;;  %v230_v63 = vsub.s32 0, %v3875_v62  ;;  %s3736_s26 = smov 88  }
  0x18   :  { %3482 = vmatpush3.bf16.msra.mxu0 %v3479_v7  ;;  %3205 = vmatpush3.bf16.msra.mxu1 %v3559_v43  ;;  %v3560_v44 = vld [vmem:[%s4466_s4 + $0x8] sm:$0xff]   ;;  %v2990_v55 = vld [vmem:[%s4465_s3 + $0x51] ss:$0 sm:$0xff]  ;;  %s3734_s3 = smov 96   ;;  %s3737_s27 = smov 120   ;;  %vm1224_vm11 = vcmask 130048  }
  0x19   :  { %3526 = vset.pattern.permute.xlu1 %v3731_v11  ;;  %3524 = vset.pattern.permute.xlu0 %v3731_v11  ;;  %s3738_s28 = smov 56   ;;  %s3739_s29 = smov 80   ;;  %vm1227_vm12 = vcmask 195584   ;;  %vm1439_vm13 = vcmask 523264   ;;  %vm2855_vm14 = vcmask 7168   ;;  %vm2895_vm15 = vcmask 1041409  }
  0x1a   :  { %58 = vperm.xlu1 %3526, %v43_v1   ;;  %55 = vperm.xlu0 %3524, %v42_v2   ;;  %s3740_s30 = smov 112   ;;  %s3741_s8 = smov 48  }
  0x1b   :  { %3484 = vmatprep.subr.bf16.mxu0 %v3483_v10  ;;  %3206 = vmatprep.subr.bf16.mxu1 %v3732_v15  ;;  %s3742_s9 = smov 72   ;;  %s3743_s10 = smov 104  }
  0x1c   :  { %3486 = vmatpush3.bf16.msra.mxu0 %v3483_v10  ;;  %3207 = vmatpush3.bf16.msra.mxu1 %v3560_v44  ;;  %s3744_s11 = smov 40   ;;  %s3745_s13 = smov 16  }
  0x1d   :  { %3488 = vmatprep.subr.bf16.mxu0 %v3487_v12  ;;  %3212 = vmatprep.subr.bf16.mxu1 %v3732_v15  ;;  %s3746_s18 = smov 24  }
  0x1e   :  { %3558 = vset.pattern.permute.xlu1 %v3730_v0  ;;  %3557 = vset.pattern.permute.xlu0 %v3730_v0  ;;  %v3878_v0 = vld [vmem:[#allocation2] sm:$0xff] }
  0x1f   :  { %v231_v1 = vrot.slane %v3878_v0, %v230_v63 }
  0x20   :  { %3490 = vmatpush3.bf16.msra.mxu0 %v3487_v12 }
  0x21   :  { %3492 = vmatprep.subr.bf16.mxu0 %v3491_v16 }
  0x24   :  { %3494 = vmatpush3.bf16.msra.mxu0 %v3491_v16  ;;  %v3906_v16 = vld [vmem:[%s4463_s1] ss:$0 sm:$0xff] }
  0x25   :  { %3199 = vmatprep.subr.mxu0 %v76_v17 }
  0x28   :  { %3200 = vmatpush3.msra.mxu0 %v76_v17 }
  0x29   :  { %3230 = vmatprep.subr.bf16.mxu0 %v3732_v15 }
  0x94   :  { %v48_v19 = vpop.permute.xlu0 %47  ;;  %v51_v20 = vpop.permute.xlu1 %50 }
  0x95   :  { %vm53_vm0 = vcmp.eq.s32.totalorder %v45_v21, %v51_v20  ;;  %vm52_vm3 = vcmp.eq.s32.totalorder %v45_v21, %v48_v19 }
  0x99   :  { %v59_v22 = vpop.permute.xlu1 %58  ;;  %v56_v23 = vpop.permute.xlu0 %55 }
  0x9a   :  { %vm61_vm1 = vcmp.eq.s32.totalorder %v45_v21, %v59_v22  ;;  %vm60_vm2 = vcmp.eq.s32.totalorder %v45_v21, %v56_v23 }
  0x9b   :  { %vm63_vm4 = vmor %vm53_vm0, %vm61_vm1 }
  0x9c   :  { %vm62_vm6 = vmor %vm52_vm3, %vm60_vm2  ;;  %v2986_v24 = vsel %vm63_vm4, 1.0, %v3732_v15 }
  0x9d   :  { %v2985_v25 = vsel %vm62_vm6, 1.0, %v3732_v15 }
  0x9e   :  { %3201 = vmatprep.mubr.msk.f32.mxu0 %vm77_vm5, %v2985_v25 }
  0x9f   :  { %3202 = vmatmul.mubr.msk.f32.vlgmr.msra.gmra.mrb[0].mxu0 %vm77_vm5, %v2986_v24  ;;  %v3913_v24 = vld [vmem:[%s4463_s1 + $0x1] ss:$0 sm:$0xff] }
  0xa0   :  { %3232 = vmatprep.mubr.msk.bf16.mxu0 %vm3733_vm8, %v3732_v15 }
 0x172   :  { %v3203_v27 = vpop.f32.mrb[0].mxu0 }
 0x173   :  { %v161_v28 = vadd.f32 %v3203_v27, %v159_v26  ;;  %v150_v29 = vpop.f32.mrb[1].mxu0 }
 0x174   :  { %v160_v30 = vadd.f32 %v159_v26, %v150_v29 }
 0x175   :  { %v168_v31 = vsel %vm164_vm7, %v161_v28, 0.0 }
 0x176   :  { %169 = vadd.xlane.f32.xlu0 %v168_v31  ;;  %v165_v32 = vsel %vm164_vm7, %v160_v30, 0.0 }
 0x177   :  { %166 = vadd.xlane.f32.xlu1 %v165_v32 }
 0x203   :  { %v170_v33 = vpop.xlane.xlu0 %169 }
 0x204   :  { %v173_v34 = vmul.f32 0.03125, %v170_v33  ;;  %v167_v35 = vpop.xlane.xlu1 %166 }
 0x205   :  { %v172_v36 = vmul.f32 0.03125, %v167_v35 }
 0x206   :  { %v175_v37 = vsub.f32 %v161_v28, %v173_v34 }
 0x207   :  { %v174_v38 = vsub.f32 %v160_v30, %v172_v36 }
 0x208   :  { %v177_v39 = vmul.f32 %v175_v37, %v175_v37 }
 0x209   :  { %v176_v40 = vmul.f32 %v174_v38, %v174_v38 }
 0x20a   :  { %v181_v41 = vsel %vm164_vm7, %v177_v39, 0.0 }
 0x20b   :  { %182 = vadd.xlane.f32.xlu1 %v181_v41  ;;  %v178_v42 = vsel %vm164_vm7, %v176_v40, 0.0 }
 0x20c   :  { %179 = vadd.xlane.f32.xlu0 %v178_v42 }
 0x298   :  { %v183_v45 = vpop.xlane.xlu1 %182 }
 0x299   :  { %v185_v46 = vmul.f32 0.03125, %v183_v45  ;;  %v180_v47 = vpop.xlane.xlu0 %179 }
 0x29a   :  { %v184_v48 = vmul.f32 0.03125, %v180_v47 }
 0x29b   :  { %v187_v49 = vadd.f32 1e-12, %v185_v46 }
 0x29c   :  { %v186_v50 = vadd.f32 1e-12, %v184_v48 }
 0x29d   :  { %3579 = vrsqrt.f32 %v187_v49 }
 0x29e   :  { %3581 = vrsqrt.f32 %v186_v50 }
 0x2a7   :  { %v3580_v51 = vpop.eup %3579 }
 0x2a8   :  { %v3582_v53 = vpop.eup %3581  ;;  %v191_v54 = vmul.f32 %v3580_v51, %v175_v37 }
 0x2a9   :  { %v190_v56 = vmul.f32 %v3582_v53, %v174_v38 }
 0x2aa   :  { %v197_v57 = vmul.f32 %v2989_v52, %v191_v54 }
 0x2ab   :  { %v196_v58 = vmul.f32 %v2989_v52, %v190_v56 }
 0x2ac   :  { %v3865_v59 = vadd.f32 %v2990_v55, %v197_v57 }
 0x2ad   :  { %v3867_v60 = vadd.f32 %v2990_v55, %v196_v58 }
 0x2af   :  { %v227_v61 = vpack.c.bf16 %v3865_v59, %v3867_v60 }
 0x2b1   :  { %3209 = vmatmul.mubr.msk.bf16.vlgmr.msra.gmra.mrb[0].mxu1 %vm164_vm7, %v227_v61 }
 0x2b2   :  { %3214 = vmatprep.mubr.msk.bf16.mxu1 %vm3733_vm8, %v3732_v15 }
 0x384   :  { %v281_v2 = vpop.f32.mrb[0].mxu1 }
 0x385   :  { %v282_v3 = vadd.f32 %v281_v2, %v231_v1  ;;  %v3210_v4 = vpop.f32.mrb[1].mxu1 }
 0x386   :  { %v284_v5 = vpop.f32.mrb[2].mxu1 }
 0x387   :  { %v3883_v6 = vpack.c.bf16 %v282_v3, %v282_v3  ;;  %v285_v7 = vadd.f32 %v284_v5, %v231_v1  ;;  %v3211_v8 = vpop.f32.mrb[3].mxu1 }
 0x389   :  { %v3885_v9 = vpack.c.bf16 %v285_v7, %v285_v7  ;;  %291 = vrot.lane.b32.xlu0 %v3883_v6, %s3734_s3 }
 0x38b   :  { %341 = vrot.lane.b32.xlu1 %v3885_v9, %s3734_s3 }
 0x3fb   :  { %v292_v10 = vpop.permute.xlu0 %291 }
 0x3fc   :  { %v298_v11 = vsel %vm293_vm9, %v292_v10, 0 }
 0x3fd   :  { %3213 = vmatpush3.bf16.xpose.msra.mxu1 %v298_v11  ;;  %v342_v12 = vpop.permute.xlu1 %341 }
 0x3fe   :  { %3218 = vmatprep.subr.bf16.mxu1 %v3732_v15  ;;  %v347_v13 = vsel %vm293_vm9, %v342_v12, 0 }
 0x404   :  { %3215 = vmatmul.mubr.msk.bf16.vlgmr.msra.gmra.mrb[4].mxu1 %vm293_vm9, %v3883_v6 }
 0x405   :  { %3219 = vmatpush3.bf16.xpose.msra.mxu1 %v347_v13  ;;  %3220 = vmatprep.mubr.msk.bf16.mxu1 %vm3733_vm8, %v3732_v15 }
 0x406   :  { %3224 = vmatprep.subr.bf16.mxu1 %v3732_v15 }
 0x40c   :  { %3221 = vmatmul.mubr.msk.bf16.vlgmr.msra.gmra.mrb[8].mxu1 %vm293_vm9, %v3885_v9 }
 0x40d   :  { %3226 = vmatprep.mubr.msk.bf16.mxu1 %vm3733_vm8, %v3732_v15 }
 0x4d7   :  { %v334_v14 = vpop.f32.mrb[4].mxu1 }
 0x4d8   :  { %v389_v17 = vmul.f32 0.35355338, %v334_v14  ;;  %v3216_v18 = vpop.f32.mrb[5].mxu1 }
 0x4d9   :  { %v337_v19 = vpop.f32.mrb[6].mxu1 }
 0x4da   :  { %v3217_v20 = vpop.f32.mrb[7].mxu1  ;;  %v403_v21 = vadd.f32 %v3906_v16, %v389_v17 }
 0x4dc   :  { %v405_v22 = vsel %vm293_vm9, %v403_v21, -inf }
 0x4dd   :  { %406 = vmax.xlane.f32.xlu1 %v405_v22 }
 0x4df   :  { %v383_v23 = vpop.f32.mrb[8].mxu1 }
 0x4e0   :  { %v390_v25 = vmul.f32 0.35355338, %v383_v23  ;;  %v3222_v26 = vpop.f32.mrb[9].mxu1 }
 0x4e1   :  { %v386_v27 = vpop.f32.mrb[10].mxu1 }
 0x4e2   :  { %v3223_v28 = vpop.f32.mrb[11].mxu1  ;;  %v404_v29 = vadd.f32 %v3913_v24, %v390_v25 }
 0x4e4   :  { %v408_v30 = vsel %vm293_vm9, %v404_v29, -inf }
 0x4e5   :  { %409 = vmax.xlane.f32.xlu0 %v408_v30 }
 0x4ee   :  { %478 = vrot.lane.b32.xlu1 %v3885_v9, %s3735_s0 }
 0x4fb   :  { %429 = vrot.lane.b32.xlu0 %v3883_v6, %s3735_s0 }
 0x56a   :  { %v407_v31 = vpop.xlane.xlu1 %406 }
 0x56b   :  { %v411_v32 = vsub.f32 %v403_v21, %v407_v31 }
 0x56d   :  { %v413_v33 = vmul.f32 1.442695, %v411_v32 }
 0x56e   :  { %v479_v34 = vpop.permute.xlu1 %478 }
 0x56f   :  { %3583 = vpow2.f32 %v413_v33  ;;  %v484_v35 = vsel %vm434_vm10, %v479_v34, 0 }
 0x570   :  { %3231 = vmatpush3.bf16.msra.mxu0 %v484_v35 }
 0x571   :  { %3242 = vmatprep.subr.bf16.mxu0 %v3732_v15 }
 0x572   :  { %v410_v36 = vpop.xlane.xlu0 %409 }
 0x573   :  { %v412_v37 = vsub.f32 %v404_v29, %v410_v36 }
 0x575   :  { %v415_v38 = vmul.f32 1.442695, %v412_v37 }
 0x576   :  { %v430_v39 = vpop.permute.xlu0 %429 }
 0x577   :  { %3585 = vpow2.f32 %v415_v38  ;;  %v436_v40 = vsel %vm434_vm10, %v430_v39, 0 }
 0x578   :  { %3225 = vmatpush3.bf16.msra.mxu1 %v436_v40 }
 0x579   :  { %v3584_v41 = vpop.eup %3583  ;;  %3236 = vmatprep.subr.bf16.mxu1 %v3732_v15 }
 0x57a   :  { %v417_v42 = vsel %vm293_vm9, %v3584_v41, 0.0 }
 0x57b   :  { %418 = vadd.xlane.f32.xlu0 %v417_v42 }
 0x581   :  { %v3586_v43 = vpop.eup %3585 }
 0x582   :  { %v420_v44 = vsel %vm293_vm9, %v3586_v43, 0.0 }
 0x583   :  { %421 = vadd.xlane.f32.xlu1 %v420_v44 }
 0x591   :  { %578 = vrot.lane.b32.xlu0 %v3885_v9, %s3736_s26 }
 0x594   :  { %528 = vrot.lane.b32.xlu1 %v3883_v6, %s3736_s26 }
 0x595   :  { %576 = vrot.lane.b32.xlu0 %v3885_v9, %s3737_s27 }
 0x598   :  { %526 = vrot.lane.b32.xlu1 %v3883_v6, %s3737_s27 }
 0x608   :  { %v419_v45 = vpop.xlane.xlu0 %418 }
 0x609   :  { %3587 = vrcp.f32 %v419_v45 }
 0x60c   :  { %v579_v54 = vpop.permute.xlu0 %578 }
 0x60d   :  { %v584_v57 = vsel %vm293_vm9, %v579_v54, 0 }
 0x610   :  { %v422_v46 = vpop.xlane.xlu1 %421  ;;  %v577_v58 = vpop.permute.xlu0 %576 }
 0x611   :  { %3589 = vrcp.f32 %v422_v46 }
 0x613   :  { %v3588_v47 = vpop.eup %3587 }
 0x614   :  { %v425_v48 = vmul.f32 %v3588_v47, %v3584_v41  ;;  %v529_v49 = vpop.permute.xlu1 %528 }
 0x615   :  { %v534_v51 = vsel %vm293_vm9, %v529_v49, 0 }
 0x616   :  { %v427_v50 = vpack.c.bf16 %v425_v48, %v425_v48 }
 0x618   :  { %3227 = vmatmul.mubr.msk.bf16.vlgmr.msra.gmra.mrb[12].mxu1 %vm293_vm9, %v427_v50  ;;  %v527_v56 = vpop.permute.xlu1 %526 }
 0x619   :  { %3237 = vmatpush3.bf16.xpose.msra.mxu1 %v534_v51  ;;  %3238 = vmatprep.mubr.msk.bf16.mxu1 %vm3733_vm8, %v3732_v15 }
 0x61a   :  { %3248 = vmatprep.subr.bf16.mxu1 %v3732_v15 }
 0x61b   :  { %v3590_v52 = vpop.eup %3589 }
 0x61c   :  { %v426_v53 = vmul.f32 %v3590_v52, %v3586_v43 }
 0x61e   :  { %v428_v55 = vpack.c.bf16 %v426_v53, %v426_v53 }
 0x620   :  { %3233 = vmatmul.mubr.msk.bf16.vlgmr.msra.gmra.mrb[4].mxu0 %vm293_vm9, %v428_v55  ;;  %3239 = vmatmul.mubr.msk.bf16.vlgmr.msra.gmra.mrb[16].mxu1 %vm293_vm9, %v527_v56 }
 0x621   :  { %3243 = vmatpush3.bf16.xpose.msra.mxu0 %v584_v57  ;;  %3244 = vmatprep.mubr.msk.bf16.mxu0 %vm3733_vm8, %v3732_v15 }
 0x622   :  { %3254 = vmatprep.subr.bf16.mxu0 %v3732_v15  ;;  %3250 = vmatprep.mubr.msk.bf16.mxu1 %vm3733_vm8, %v3732_v15 }
 0x628   :  { %3245 = vmatmul.mubr.msk.bf16.vlgmr.msra.gmra.mrb[8].mxu0 %vm293_vm9, %v577_v58 }
 0x629   :  { %3256 = vmatprep.mubr.msk.bf16.mxu0 %vm3733_vm8, %v3732_v15 }
 0x6eb   :  { %v3951_v61 = vpop.f32.mrb[12].mxu1 }
 0x6ec   :  { %v3228_v1 = vpop.f32.mrb[13].mxu1 }
 0x6ed   :  { %v475_v2 = vpop.f32.mrb[14].mxu1 }
 0x6ee   :  { %v3229_v3 = vpop.f32.mrb[15].mxu1 }
 0x6f3   :  { %v3953_v4 = vpop.f32.mrb[4].mxu0  ;;  %v570_v5 = vpop.f32.mrb[16].mxu1 }
 0x6f4   :  { %v626_v7 = vmul.f32 0.35355338, %v570_v5  ;;  %v3234_v8 = vpop.f32.mrb[5].mxu0  ;;  %v3240_v10 = vpop.f32.mrb[17].mxu1 }
 0x6f5   :  { %v523_v11 = vpop.f32.mrb[6].mxu0  ;;  %v573_v12 = vpop.f32.mrb[18].mxu1 }
 0x6f6   :  { %v3235_v13 = vpop.f32.mrb[7].mxu0  ;;  %v3241_v14 = vpop.f32.mrb[19].mxu1  ;;  %v628_v17 = vadd.f32 %v3906_v16, %v626_v7 }
 0x6f8   :  { %v630_v18 = vsel %vm293_vm9, %v628_v17, -inf }
 0x6f9   :  { %631 = vmax.xlane.f32.xlu1 %v630_v18 }
 0x6fb   :  { %v620_v19 = vpop.f32.mrb[8].mxu0 }
 0x6fc   :  { %v627_v20 = vmul.f32 0.35355338, %v620_v19  ;;  %v3246_v21 = vpop.f32.mrb[9].mxu0 }
 0x6fd   :  { %v623_v22 = vpop.f32.mrb[10].mxu0 }
 0x6fe   :  { %v3247_v23 = vpop.f32.mrb[11].mxu0  ;;  %v629_v25 = vadd.f32 %v3913_v24, %v627_v20 }
 0x700   :  { %v633_v26 = vsel %vm293_vm9, %v629_v25, -inf }
 0x701   :  { %634 = vmax.xlane.f32.xlu0 %v633_v26 }
 0x70a   :  { %702 = vrot.lane.b32.xlu1 %v3885_v9, %s3738_s28 }
 0x717   :  { %654 = vrot.lane.b32.xlu0 %v3883_v6, %s3738_s28 }
 0x786   :  { %v632_v27 = vpop.xlane.xlu1 %631 }
 0x787   :  { %v636_v28 = vsub.f32 %v628_v17, %v632_v27 }
 0x789   :  { %v638_v29 = vmul.f32 1.442695, %v636_v28 }
 0x78a   :  { %v703_v30 = vpop.permute.xlu1 %702 }
 0x78b   :  { %3591 = vpow2.f32 %v638_v29  ;;  %v708_v31 = vsel %vm434_vm10, %v703_v30, 0 }
 0x78c   :  { %3255 = vmatpush3.bf16.msra.mxu0 %v708_v31 }
 0x78d   :  { %3266 = vmatprep.subr.bf16.mxu0 %v3732_v15 }
 0x78e   :  { %v635_v32 = vpop.xlane.xlu0 %634 }
 0x78f   :  { %v637_v33 = vsub.f32 %v629_v25, %v635_v32 }
 0x791   :  { %v640_v34 = vmul.f32 1.442695, %v637_v33 }
 0x792   :  { %v655_v35 = vpop.permute.xlu0 %654 }
 0x793   :  { %3593 = vpow2.f32 %v640_v34  ;;  %v660_v36 = vsel %vm434_vm10, %v655_v35, 0 }
 0x794   :  { %3249 = vmatpush3.bf16.msra.mxu1 %v660_v36 }
 0x795   :  { %v3592_v37 = vpop.eup %3591  ;;  %3260 = vmatprep.subr.bf16.mxu1 %v3732_v15 }
 0x796   :  { %v642_v38 = vsel %vm293_vm9, %v3592_v37, 0.0 }
 0x797   :  { %643 = vadd.xlane.f32.xlu0 %v642_v38 }
 0x79d   :  { %v3594_v39 = vpop.eup %3593 }
 0x79e   :  { %v645_v40 = vsel %vm293_vm9, %v3594_v39, 0.0 }
 0x79f   :  { %646 = vadd.xlane.f32.xlu1 %v645_v40 }
 0x7ad   :  { %802 = vrot.lane.b32.xlu0 %v3885_v9, %s3739_s29 }
 0x7b0   :  { %752 = vrot.lane.b32.xlu1 %v3883_v6, %s3739_s29 }
 0x7b1   :  { %800 = vrot.lane.b32.xlu0 %v3885_v9, %s3740_s30 }
 0x7b4   :  { %750 = vrot.lane.b32.xlu1 %v3883_v6, %s3740_s30 }
 0x824   :  { %v644_v41 = vpop.xlane.xlu0 %643 }
 0x825   :  { %3595 = vrcp.f32 %v644_v41 }
 0x828   :  { %v803_v50 = vpop.permute.xlu0 %802 }
 0x829   :  { %v808_v53 = vsel %vm293_vm9, %v803_v50, 0 }
 0x82c   :  { %v647_v42 = vpop.xlane.xlu1 %646  ;;  %v801_v54 = vpop.permute.xlu0 %800 }
 0x82d   :  { %3597 = vrcp.f32 %v647_v42 }
 0x82f   :  { %v3596_v43 = vpop.eup %3595 }
 0x830   :  { %v650_v44 = vmul.f32 %v3596_v43, %v3592_v37  ;;  %v753_v45 = vpop.permute.xlu1 %752 }
 0x831   :  { %v758_v47 = vsel %vm293_vm9, %v753_v45, 0 }
 0x832   :  { %v652_v46 = vpack.c.bf16 %v650_v44, %v650_v44 }
 0x834   :  { %3251 = vmatmul.mubr.msk.bf16.vlgmr.msra.gmra.mrb[20].mxu1 %vm293_vm9, %v652_v46  ;;  %v751_v52 = vpop.permute.xlu1 %750 }
 0x835   :  { %3261 = vmatpush3.bf16.xpose.msra.mxu1 %v758_v47  ;;  %3262 = vmatprep.mubr.msk.bf16.mxu1 %vm3733_vm8, %v3732_v15 }
 0x836   :  { %3272 = vmatprep.subr.bf16.mxu1 %v3732_v15 }
 0x837   :  { %v3598_v48 = vpop.eup %3597 }
 0x838   :  { %v651_v49 = vmul.f32 %v3598_v48, %v3594_v39 }
 0x83a   :  { %v653_v51 = vpack.c.bf16 %v651_v49, %v651_v49 }
 0x83c   :  { %3257 = vmatmul.mubr.msk.bf16.vlgmr.msra.gmra.mrb[12].mxu0 %vm293_vm9, %v653_v51  ;;  %3263 = vmatmul.mubr.msk.bf16.vlgmr.msra.gmra.mrb[24].mxu1 %vm293_vm9, %v751_v52 }
 0x83d   :  { %3267 = vmatpush3.bf16.xpose.msra.mxu0 %v808_v53  ;;  %3268 = vmatprep.mubr.msk.bf16.mxu0 %vm3733_vm8, %v3732_v15 }
 0x83e   :  { %3278 = vmatprep.subr.bf16.mxu0 %v3732_v15  ;;  %3274 = vmatprep.mubr.msk.bf16.mxu1 %vm3733_vm8, %v3732_v15 }
 0x844   :  { %3269 = vmatmul.mubr.msk.bf16.vlgmr.msra.gmra.mrb[16].mxu0 %vm293_vm9, %v801_v54 }
 0x845   :  { %3280 = vmatprep.mubr.msk.bf16.mxu0 %vm3733_vm8, %v3732_v15 }
 0x907   :  { %v3993_v55 = vpop.f32.mrb[20].mxu1 }
 0x908   :  { %v3252_v56 = vpop.f32.mrb[21].mxu1 }
 0x909   :  { %v699_v57 = vpop.f32.mrb[22].mxu1 }
 0x90a   :  { %v3253_v58 = vpop.f32.mrb[23].mxu1 }
 0x90f   :  { %v3995_v1 = vpop.f32.mrb[12].mxu0  ;;  %v794_v2 = vpop.f32.mrb[24].mxu1 }
 0x910   :  { %v3527_v3 = vpack.i.bf16 %v3995_v1, %v3993_v55  ;;  %v850_v5 = vmul.f32 0.35355338, %v794_v2  ;;  %v3258_v7 = vpop.f32.mrb[13].mxu0  ;;  %v3264_v8 = vpop.f32.mrb[25].mxu1 }
 0x911   :  { %v747_v10 = vpop.f32.mrb[14].mxu0  ;;  %v797_v11 = vpop.f32.mrb[26].mxu1 }
 0x912   :  { %v3259_v12 = vpop.f32.mrb[15].mxu0  ;;  %v3265_v13 = vpop.f32.mrb[27].mxu1  ;;  %v852_v14 = vadd.f32 %v3906_v16, %v850_v5 }
 0x914   :  { %v854_v17 = vsel %vm293_vm9, %v852_v14, -inf }
 0x915   :  { %855 = vmax.xlane.f32.xlu1 %v854_v17 }
 0x917   :  { %v844_v18 = vpop.f32.mrb[16].mxu0 }
 0x918   :  { %v851_v19 = vmul.f32 0.35355338, %v844_v18  ;;  %v3270_v20 = vpop.f32.mrb[17].mxu0 }
 0x919   :  { %v847_v21 = vpop.f32.mrb[18].mxu0 }
 0x91a   :  { %v3271_v22 = vpop.f32.mrb[19].mxu0  ;;  %v853_v23 = vadd.f32 %v3913_v24, %v851_v19 }
 0x91c   :  { %v857_v25 = vsel %vm293_vm9, %v853_v23, -inf }
 0x91d   :  { %858 = vmax.xlane.f32.xlu0 %v857_v25 }
 0x926   :  { %926 = vrot.lane.b32.xlu1 %v3885_v9, %s3741_s8 }
 0x933   :  { %878 = vrot.lane.b32.xlu0 %v3883_v6, %s3741_s8 }
 0x9a2   :  { %v856_v26 = vpop.xlane.xlu1 %855 }
 0x9a3   :  { %v860_v27 = vsub.f32 %v852_v14, %v856_v26 }
 0x9a5   :  { %v862_v28 = vmul.f32 1.442695, %v860_v27 }
 0x9a6   :  { %v927_v29 = vpop.permute.xlu1 %926 }
 0x9a7   :  { %3599 = vpow2.f32 %v862_v28  ;;  %v932_v30 = vsel %vm434_vm10, %v927_v29, 0 }
 0x9a8   :  { %3279 = vmatpush3.bf16.msra.mxu0 %v932_v30 }
 0x9a9   :  { %3290 = vmatprep.subr.bf16.mxu0 %v3732_v15 }
 0x9aa   :  { %v859_v31 = vpop.xlane.xlu0 %858 }
 0x9ab   :  { %v861_v32 = vsub.f32 %v853_v23, %v859_v31 }
 0x9ad   :  { %v864_v33 = vmul.f32 1.442695, %v861_v32 }
 0x9ae   :  { %v879_v34 = vpop.permute.xlu0 %878 }
 0x9af   :  { %3601 = vpow2.f32 %v864_v33  ;;  %v884_v35 = vsel %vm434_vm10, %v879_v34, 0 }
 0x9b0   :  { %3273 = vmatpush3.bf16.msra.mxu1 %v884_v35 }
 0x9b1   :  { %v3600_v36 = vpop.eup %3599  ;;  %3284 = vmatprep.subr.bf16.mxu1 %v3732_v15 }
 0x9b2   :  { %v866_v37 = vsel %vm293_vm9, %v3600_v36, 0.0 }
 0x9b3   :  { %867 = vadd.xlane.f32.xlu0 %v866_v37 }
 0x9b9   :  { %v3602_v38 = vpop.eup %3601 }
 0x9ba   :  { %v869_v39 = vsel %vm293_vm9, %v3602_v38, 0.0 }
 0x9bb   :  { %870 = vadd.xlane.f32.xlu1 %v869_v39 }
 0x9c9   :  { %1026 = vrot.lane.b32.xlu0 %v3885_v9, %s3742_s9 }
 0x9cc   :  { %976 = vrot.lane.b32.xlu1 %v3883_v6, %s3742_s9 }
 0x9cd   :  { %1024 = vrot.lane.b32.xlu0 %v3885_v9, %s3743_s10 }
 0x9d0   :  { %974 = vrot.lane.b32.xlu1 %v3883_v6, %s3743_s10 }
 0xa40   :  { %v868_v40 = vpop.xlane.xlu0 %867 }
 0xa41   :  { %3603 = vrcp.f32 %v868_v40 }
 0xa44   :  { %v1027_v49 = vpop.permute.xlu0 %1026 }
 0xa45   :  { %v1032_v52 = vsel %vm293_vm9, %v1027_v49, 0 }
 0xa48   :  { %v871_v41 = vpop.xlane.xlu1 %870  ;;  %v1025_v53 = vpop.permute.xlu0 %1024 }
 0xa49   :  { %3605 = vrcp.f32 %v871_v41 }
 0xa4b   :  { %v3604_v42 = vpop.eup %3603 }
 0xa4c   :  { %v874_v43 = vmul.f32 %v3604_v42, %v3600_v36  ;;  %v977_v44 = vpop.permute.xlu1 %976 }
 0xa4d   :  { %v982_v46 = vsel %vm293_vm9, %v977_v44, 0  ;;  %v3562_v44 = vld [vmem:[%s4466_s4 + $0x18] sm:$0xff]  }
 0xa4e   :  { %v876_v45 = vpack.c.bf16 %v874_v43, %v874_v43  ;;  %v3561_v43 = vld [vmem:[%s4466_s4 + $0x10] sm:$0xff]  }
 0xa50   :  { %3275 = vmatmul.mubr.msk.bf16.vlgmr.msra.gmra.mrb[28].mxu1 %vm293_vm9, %v876_v45  ;;  %v975_v51 = vpop.permute.xlu1 %974 }
 0xa51   :  { %3285 = vmatpush3.bf16.xpose.msra.mxu1 %v982_v46  ;;  %3286 = vmatprep.mubr.msk.bf16.mxu1 %vm3733_vm8, %v3732_v15 }
 0xa52   :  { %3296 = vmatprep.subr.bf16.mxu1 %v3732_v15 }
 0xa53   :  { %v3606_v47 = vpop.eup %3605 }
 0xa54   :  { %v875_v48 = vmul.f32 %v3606_v47, %v3602_v38 }
 0xa56   :  { %v877_v50 = vpack.c.bf16 %v875_v48, %v875_v48 }
 0xa58   :  { %3281 = vmatmul.mubr.msk.bf16.vlgmr.msra.gmra.mrb[20].mxu0 %vm293_vm9, %v877_v50  ;;  %3287 = vmatmul.mubr.msk.bf16.vlgmr.msra.gmra.mrb[32].mxu1 %vm293_vm9, %v975_v51 }
 0xa59   :  { %3291 = vmatpush3.bf16.xpose.msra.mxu0 %v1032_v52  ;;  %3292 = vmatprep.mubr.msk.bf16.mxu0 %vm3733_vm8, %v3732_v15 }
 0xa5a   :  { %3302 = vmatprep.subr.bf16.mxu0 %v3732_v15  ;;  %3298 = vmatprep.mubr.msk.bf16.mxu1 %vm3733_vm8, %v3732_v15 }
 0xa60   :  { %3293 = vmatmul.mubr.msk.bf16.vlgmr.msra.gmra.mrb[24].mxu0 %vm293_vm9, %v1025_v53 }
 0xa61   :  { %3304 = vmatprep.mubr.msk.bf16.mxu0 %vm3733_vm8, %v3732_v15 }
 0xb23   :  { %v920_v54 = vpop.f32.mrb[28].mxu1 }
 0xb24   :  { %v3276_v56 = vpop.f32.mrb[29].mxu1 }
 0xb25   :  { %v923_v57 = vpop.f32.mrb[30].mxu1 }
 0xb26   :  { %v3277_v58 = vpop.f32.mrb[31].mxu1 }
 0xb2b   :  { %v968_v2 = vpop.f32.mrb[20].mxu0  ;;  %v1018_v5 = vpop.f32.mrb[32].mxu1 }
 0xb2c   :  { %v3532_v7 = vpack.i.bf16 %v968_v2, %v920_v54  ;;  %v1074_v8 = vmul.f32 0.35355338, %v1018_v5  ;;  %v3282_v10 = vpop.f32.mrb[21].mxu0  ;;  %v3288_v11 = vpop.f32.mrb[33].mxu1 }
 0xb2d   :  { %v971_v12 = vpop.f32.mrb[22].mxu0  ;;  %v1021_v13 = vpop.f32.mrb[34].mxu1 }
 0xb2e   :  { %v3283_v14 = vpop.f32.mrb[23].mxu0  ;;  %v3289_v17 = vpop.f32.mrb[35].mxu1  ;;  %v1076_v18 = vadd.f32 %v3906_v16, %v1074_v8 }
 0xb30   :  { %v1078_v19 = vsel %vm293_vm9, %v1076_v18, -inf }
 0xb31   :  { %1079 = vmax.xlane.f32.xlu1 %v1078_v19 }
 0xb33   :  { %v1068_v20 = vpop.f32.mrb[24].mxu0 }
 0xb34   :  { %v1075_v21 = vmul.f32 0.35355338, %v1068_v20  ;;  %v3294_v22 = vpop.f32.mrb[25].mxu0 }
 0xb35   :  { %v1071_v23 = vpop.f32.mrb[26].mxu0 }
 0xb36   :  { %v3295_v25 = vpop.f32.mrb[27].mxu0  ;;  %v1077_v26 = vadd.f32 %v3913_v24, %v1075_v21 }
 0xb38   :  { %v1081_v27 = vsel %vm293_vm9, %v1077_v26, -inf }
 0xb39   :  { %1082 = vmax.xlane.f32.xlu0 %v1081_v27 }
 0xbbe   :  { %v1080_v28 = vpop.xlane.xlu1 %1079 }
 0xbbf   :  { %v1084_v29 = vsub.f32 %v1076_v18, %v1080_v28 }
 0xbc1   :  { %v1086_v30 = vmul.f32 1.442695, %v1084_v29 }
 0xbc3   :  { %3607 = vpow2.f32 %v1086_v30 }
 0xbc6   :  { %v1083_v31 = vpop.xlane.xlu0 %1082 }
 0xbc7   :  { %v1085_v32 = vsub.f32 %v1077_v26, %v1083_v31 }
 0xbc9   :  { %v1088_v16 = vmul.f32 1.442695, %v1085_v32 }
 0xbcb   :  { %3609 = vpow2.f32 %v1088_v16 }
 0xbcd   :  { %v3608_v33 = vpop.eup %3607 }
 0xbce   :  { %v1090_v34 = vsel %vm293_vm9, %v3608_v33, 0.0 }
 0xbcf   :  { %1091 = vadd.xlane.f32.xlu0 %v1090_v34 }
 0xbd5   :  { %v3610_v35 = vpop.eup %3609 }
 0xbd6   :  { %v1093_v36 = vsel %vm293_vm9, %v3610_v35, 0.0 }
 0xbd7   :  { %1094 = vadd.xlane.f32.xlu1 %v1093_v36 }
 0xbe5   :  { %1102 = vrot.lane.b32.xlu0 %v3883_v6, %s3744_s11 }
 0xbe8   :  { %1150 = vrot.lane.b32.xlu1 %v3885_v9, %s3744_s11 }
 0xbe9   :  { %3533 = vrot.lane.b32.xlu0 %v3532_v7, %s3745_s13 }
 0xbec   :  { %3528 = vrot.lane.b32.xlu1 %v3527_v3, %s3729_s12 }
 0xc5c   :  { %v1092_v24 = vpop.xlane.xlu0 %1091 }
 0xc5d   :  { %3611 = vrcp.f32 %v1092_v24 }
 0xc60   :  { %v1103_v37 = vpop.permute.xlu0 %1102 }
 0xc61   :  { %v1108_v38 = vsel %vm434_vm10, %v1103_v37, 0 }
 0xc62   :  { %3297 = vmatpush3.bf16.msra.mxu1 %v1108_v38  ;;  %v3564_v38 = vld [vmem:[%s4466_s4 + $0x28] sm:$0xff]  }
 0xc63   :  { %3308 = vmatprep.subr.bf16.mxu1 %v3732_v15 }
 0xc64   :  { %v1095_v6 = vpop.xlane.xlu1 %1094  ;;  %v3534_v58 = vpop.permute.xlu0 %3533 }
 0xc65   :  { %3613 = vrcp.f32 %v1095_v6  ;;  %v3536_v7 = vunpack.i.h.bf16 %v3534_v58  ;;  %v3535_v8 = vunpack.i.l.bf16 %v3534_v58  ;;  %v1334_v58 = vsub.s32 4, %v3875_v62 }
 0xc67   :  { %v3612_v39 = vpop.eup %3611 }
 0xc68   :  { %v1098_v9 = vmul.f32 %v3612_v39, %v3608_v33  ;;  %v1151_v40 = vpop.permute.xlu1 %1150 }
 0xc69   :  { %v1156_v41 = vsel %vm434_vm10, %v1151_v40, 0 }
 0xc6a   :  { %3303 = vmatpush3.bf16.msra.mxu0 %v1156_v41  ;;  %v1100_v42 = vpack.c.bf16 %v1098_v9, %v1098_v9 }
 0xc6b   :  { %3316 = vmatprep.subr.bf16.mxu0 %v3732_v15 }
 0xc6c   :  { %3299 = vmatmul.mubr.msk.bf16.vlgmr.msra.gmra.mrb[36].mxu1 %vm293_vm9, %v1100_v42  ;;  %v3529_v54 = vpop.permute.xlu1 %3528 }
 0xc6d   :  { %3312 = vmatprep.mubr.msk.bf16.mxu1 %vm3733_vm8, %v3732_v15  ;;  %3309 = vmatpush3.bf16.msra.mxu1 %v3561_v43  ;;  %v3531_v56 = vunpack.i.h.bf16 %v3529_v54  ;;  %v3530_v57 = vunpack.i.l.bf16 %v3529_v54  ;;  %v3566_v54 = vld [vmem:[%s4466_s4 + $0x38] sm:$0xff]  }
 0xc6e   :  { %3310 = vmatprep.subr.bf16.mxu1 %v3732_v15 }
 0xc6f   :  { %v3614_v55 = vpop.eup %3613  ;;  %v1223_v2 = vsel %vm293_vm9, %v3953_v4, %v3531_v56  ;;  %v1222_v5 = vsel %vm293_vm9, %v3951_v61, %v3530_v57  ;;  %v1233_v61 = vsub.s32 1, %v3875_v62  ;;  %v3567_v56 = vld [vmem:[%s4466_s4 + $0x40] sm:$0xff]   ;;  %v3568_v57 = vld [vmem:[%s4466_s4 + $0x48] sm:$0xff]  }
 0xc70   :  { %v1099_v1 = vmul.f32 %v3614_v55, %v3610_v35  ;;  %v1225_v13 = vsel %vm1224_vm11, %v1222_v5, %v3535_v8  ;;  %v1226_v14 = vsel %vm1224_vm11, %v1223_v2, %v3536_v7  ;;  %v1321_v55 = vsub.s32 2, %v3875_v62 }
 0xc71   :  { %3311 = vmatpush3.bf16.msra.mxu1 %v3562_v44  ;;  %v1234_v4 = vrot.slane %v3878_v0, %v1233_v61  ;;  %v1327_v44 = vsub.s32 3, %v3875_v62  ;;  %v1335_v2 = vrot.slane %v3878_v0, %v1334_v58 }
 0xc72   :  { %v1101_v3 = vpack.c.bf16 %v1099_v1, %v1099_v1  ;;  %3324 = vmatprep.subr.bf16.mxu1 %v3732_v15 }
 0xc74   :  { %3305 = vmatmul.mubr.msk.bf16.vlgmr.msra.gmra.mrb[28].mxu0 %vm293_vm9, %v1101_v3  ;;  %v1322_v3 = vrot.slane %v3878_v0, %v1321_v55 }
 0xc75   :  { %3320 = vmatprep.mubr.msk.bf16.mxu0 %vm3733_vm8, %v3732_v15 }
 0xd3f   :  { %v1144_v45 = vpop.f32.mrb[36].mxu1 }
 0xd40   :  { %v3300_v46 = vpop.f32.mrb[37].mxu1 }
 0xd41   :  { %v1147_v47 = vpop.f32.mrb[38].mxu1 }
 0xd42   :  { %v3301_v48 = vpop.f32.mrb[39].mxu1 }
 0xd43   :  { %v1328_v48 = vrot.slane %v3878_v0, %v1327_v44 }
 0xd47   :  { %v1192_v49 = vpop.f32.mrb[28].mxu0 }
 0xd48   :  { %v3537_v50 = vpack.i.bf16 %v1192_v49, %v1144_v45  ;;  %v3306_v51 = vpop.f32.mrb[29].mxu0 }
 0xd49   :  { %v1195_v52 = vpop.f32.mrb[30].mxu0 }
 0xd4a   :  { %v3307_v53 = vpop.f32.mrb[31].mxu0  ;;  %3538 = vrot.lane.b32.xlu1 %v3537_v50, %s3746_s18 }
 0xd4b   :  { %v3565_v53 = vld [vmem:[%s4466_s4 + $0x30] sm:$0xff]  }
 0xdbc   :  { %v3539_v10 = vpop.permute.xlu1 %3538 }
 0xdbd   :  { %v3541_v11 = vunpack.i.h.bf16 %v3539_v10  ;;  %v3540_v12 = vunpack.i.l.bf16 %v3539_v10 }
 0xdbf   :  { %v1229_v17 = vsel %vm1227_vm12, %v1226_v14, %v3541_v11  ;;  %v1228_v18 = vsel %vm1227_vm12, %v1225_v13, %v3540_v12 }
 0xdc0   :  { %v1230_v19 = vpack.c.bf16 %v1229_v17, %v1228_v18 }
 0xdc2   :  { %3313 = vmatmul.mubr.msk.bf16.vlgmr.msra.gmra.mrb[40].mxu1 %vm164_vm7, %v1230_v19 }
 0xdc3   :  { %3332 = vmatprep.mubr.msk.bf16.mxu1 %vm3733_vm8, %v3732_v15  ;;  %3325 = vmatpush3.bf16.msra.mxu1 %v3565_v53 }
 0xdc4   :  { %3326 = vmatprep.subr.bf16.mxu1 %v3732_v15 }
 0xdc7   :  { %3327 = vmatpush3.bf16.msra.mxu1 %v3566_v54 }
 0xdc8   :  { %3328 = vmatprep.subr.bf16.mxu1 %v3732_v15 }
 0xdcb   :  { %3329 = vmatpush3.bf16.msra.mxu1 %v3567_v56 }
 0xdcc   :  { %3330 = vmatprep.subr.bf16.mxu1 %v3732_v15 }
 0xdcf   :  { %3331 = vmatpush3.bf16.msra.mxu1 %v3568_v57  ;;  %v1514_v57 = vsub.s32 6, %v3875_v62 }
 0xdd0   :  { %3350 = vmatprep.subr.bf16.mxu1 %v3732_v15 }
 0xe95   :  { %v1284_v20 = vpop.f32.mrb[40].mxu1 }
 0xe96   :  { %v1285_v21 = vadd.f32 %v1284_v20, %v1234_v4  ;;  %v3314_v22 = vpop.f32.mrb[41].mxu1 }
 0xe97   :  { %v1287_v23 = vpop.f32.mrb[42].mxu1 }
 0xe98   :  { %v1288_v25 = vadd.f32 %v1287_v23, %v1234_v4  ;;  %v3315_v26 = vpop.f32.mrb[43].mxu1  ;;  %v1291_v27 = vadd.f32 %v1285_v21, %v3867_v60 }
 0xe9a   :  { %v1293_v28 = vsel %vm164_vm7, %v1291_v27, 0.0  ;;  %v1292_v29 = vadd.f32 %v1288_v25, %v3865_v59  ;;  %v3563_v59 = vld [vmem:[%s4466_s4 + $0x20] sm:$0xff]  }
 0xe9b   :  { %1294 = vadd.xlane.f32.xlu0 %v1293_v28  ;;  %3317 = vmatpush3.bf16.msra.mxu0 %v3563_v59 }
 0xe9c   :  { %v1296_v30 = vsel %vm164_vm7, %v1292_v29, 0.0  ;;  %3318 = vmatprep.subr.bf16.mxu0 %v3732_v15 }
 0xe9d   :  { %1297 = vadd.xlane.f32.xlu1 %v1296_v30 }
 0xe9f   :  { %3319 = vmatpush3.bf16.msra.mxu0 %v3564_v38 }
 0xea0   :  { %3336 = vmatprep.subr.bf16.mxu0 %v3732_v15 }
 0xf28   :  { %v1295_v31 = vpop.xlane.xlu0 %1294 }
 0xf29   :  { %v1299_v32 = vmul.f32 0.03125, %v1295_v31 }
 0xf2a   :  { %v1298_v16 = vpop.xlane.xlu1 %1297 }
 0xf2b   :  { %v1301_v33 = vsub.f32 %v1291_v27, %v1299_v32  ;;  %v1300_v34 = vmul.f32 0.03125, %v1298_v16 }
 0xf2d   :  { %v1302_v35 = vsub.f32 %v1292_v29, %v1300_v34  ;;  %v1303_v36 = vmul.f32 %v1301_v33, %v1301_v33 }
 0xf2f   :  { %v1305_v24 = vsel %vm164_vm7, %v1303_v36, 0.0  ;;  %v1304_v37 = vmul.f32 %v1302_v35, %v1302_v35 }
 0xf30   :  { %1306 = vadd.xlane.f32.xlu0 %v1305_v24 }
 0xf31   :  { %v1308_v60 = vsel %vm164_vm7, %v1304_v37, 0.0 }
 0xf34   :  { %1309 = vadd.xlane.f32.xlu0 %v1308_v60 }
 0xfbd   :  { %v1307_v6 = vpop.xlane.xlu0 %1306 }
 0xfbe   :  { %v1311_v39 = vmul.f32 0.03125, %v1307_v6 }
 0xfc0   :  { %v1313_v9 = vadd.f32 1e-12, %v1311_v39 }
 0xfc1   :  { %v1310_v40 = vpop.xlane.xlu0 %1309 }
 0xfc2   :  { %3615 = vrsqrt.f32 %v1313_v9  ;;  %v1312_v41 = vmul.f32 0.03125, %v1310_v40 }
 0xfc4   :  { %v1314_v42 = vadd.f32 1e-12, %v1312_v41 }
 0xfc6   :  { %3617 = vrsqrt.f32 %v1314_v42 }
 0xfcc   :  { %v3616_v1 = vpop.eup %3615 }
 0xfcd   :  { %v1317_v43 = vmul.f32 %v3616_v1, %v1301_v33  ;;  %v1413_v33 = vsub.s32 5, %v3875_v62 }
 0xfcf   :  { %v1323_v46 = vmul.f32 %v1322_v3, %v1317_v43  ;;  %v1414_v34 = vrot.slane %v3878_v0, %v1413_v33 }
 0xfd0   :  { %v3618_v45 = vpop.eup %3617 }
 0xfd1   :  { %v1318_v47 = vmul.f32 %v3618_v45, %v1302_v35  ;;  %v1329_v50 = vadd.f32 %v1328_v48, %v1323_v46 }
 0xfd3   :  { %v1324_v49 = vmul.f32 %v1322_v3, %v1318_v47 }
 0xfd5   :  { %v1330_v51 = vadd.f32 %v1328_v48, %v1324_v49  ;;  %v3569_v48 = vld [vmem:[%s4466_s4 + $0x50] sm:$0xff]   ;;  %v3570_v49 = vld [vmem:[%s4466_s4 + $0x58] sm:$0xff]  }
 0xfd7   :  { %v1331_v52 = vpack.c.bf16 %v1330_v51, %v1329_v50 }
 0xfd9   :  { %3321 = vmatmul.mubr.msk.bf16.vlgmr.msra.gmra.mrb[32].mxu0 %vm164_vm7, %v1331_v52 }
 0xfda   :  { %3340 = vmatprep.mubr.msk.bf16.mxu0 %vm3733_vm8, %v3732_v15  ;;  %3337 = vmatpush3.bf16.msra.mxu0 %v3569_v48 }
 0xfdb   :  { %3338 = vmatprep.subr.bf16.mxu0 %v3732_v15 }
 0xfde   :  { %3339 = vmatpush3.bf16.msra.mxu0 %v3570_v49 }
 0xfdf   :  { %3344 = vmatprep.subr.bf16.mxu0 %v3732_v15 }
0x10ac   :  { %v1385_v5 = vpop.f32.mrb[32].mxu0 }
0x10ad   :  { %v1386_v7 = vadd.f32 %v1385_v5, %v1335_v2  ;;  %v3322_v8 = vpop.f32.mrb[33].mxu0 }
0x10ae   :  { %v1388_v10 = vpop.f32.mrb[34].mxu0 }
0x10af   :  { %v1394_v11 = vmul.f32 0.044715, %v1386_v7  ;;  %v1389_v12 = vadd.f32 %v1388_v10, %v1335_v2  ;;  %v3323_v13 = vpop.f32.mrb[35].mxu0  ;;  %v1392_v28 = vmul.f32 0.5, %v1386_v7  ;;  %v3675_v2 = vld [vmem:[#allocation2] sm:$0xff] }
0x10b0   :  { %v1515_v5 = vrot.slane %v3675_v2, %v1514_v57 }
0x10b1   :  { %v1396_v14 = vmul.f32 %v1394_v11, %v1386_v7  ;;  %v1395_v17 = vmul.f32 0.044715, %v1389_v12  ;;  %v1393_v29 = vmul.f32 0.5, %v1389_v12 }
0x10b3   :  { %v1398_v18 = vmul.f32 %v1396_v14, %v1386_v7  ;;  %v1397_v19 = vmul.f32 %v1395_v17, %v1389_v12 }
0x10b5   :  { %v1400_v4 = vadd.f32 %v1398_v18, %v1386_v7  ;;  %v1399_v20 = vmul.f32 %v1397_v19, %v1389_v12  ;;  %v1520_v7 = vsub.s32 7, %v3875_v62 }
0x10b7   :  { %v1402_v21 = vmul.f32 0.7978846, %v1400_v4  ;;  %v1401_v22 = vadd.f32 %v1399_v20, %v1389_v12  ;;  %v1521_v14 = vrot.slane %v3675_v2, %v1520_v7  ;;  %v4165_v20 = vld [vmem:[#allocation2 + $0x8] sm:$0xff] }
0x10b9   :  { %3619 = vtanh.f32 %v1402_v21  ;;  %v1403_v23 = vmul.f32 0.7978846, %v1401_v22  ;;  %v1551_v21 = vrot.slane %v4165_v20, %v230_v63 }
0x10bb   :  { %3621 = vtanh.f32 %v1403_v23 }
0x10c3   :  { %v3620_v25 = vpop.eup %3619 }
0x10c4   :  { %v1406_v26 = vadd.f32 1.0, %v3620_v25 }
0x10c5   :  { %v3622_v27 = vpop.eup %3621 }
0x10c6   :  { %v1407_v30 = vadd.f32 1.0, %v3622_v27  ;;  %v1408_v31 = vmul.f32 %v1406_v26, %v1392_v28 }
0x10c8   :  { %v1409_v32 = vmul.f32 %v1407_v30, %v1393_v29 }
0x10ca   :  { %v1410_v16 = vpack.c.bf16 %v1409_v32, %v1408_v31 }
0x10cc   :  { %3333 = vmatmul.mubr.msk.bf16.vlgmr.msra.gmra.mrb[44].mxu1 %vm1439_vm13, %v1410_v16 }
0x10cd   :  { %3352 = vmatprep.mubr.msk.bf16.mxu1 %vm3733_vm8, %v3732_v15 }
0x119f   :  { %v1477_v35 = vpop.f32.mrb[44].mxu1 }
0x11a0   :  { %v1478_v36 = vadd.f32 %v1477_v35, %v1414_v34  ;;  %v3334_v24 = vpop.f32.mrb[45].mxu1 }
0x11a1   :  { %v1480_v37 = vpop.f32.mrb[46].mxu1 }
0x11a2   :  { %v1481_v60 = vadd.f32 %v1480_v37, %v1414_v34  ;;  %v3335_v59 = vpop.f32.mrb[47].mxu1  ;;  %v1484_v38 = vadd.f32 %v1478_v36, %v1329_v50 }
0x11a4   :  { %v1486_v6 = vsel %vm164_vm7, %v1484_v38, 0.0  ;;  %v1485_v39 = vadd.f32 %v1481_v60, %v1330_v51 }
0x11a5   :  { %1487 = vadd.xlane.f32.xlu1 %v1486_v6  ;;  %v4193_v6 = vld [vmem:[%s4463_s1] ss:$0 sm:$0xff] }
0x11a6   :  { %v1489_v9 = vsel %vm164_vm7, %v1485_v39, 0.0 }
0x11a7   :  { %1490 = vadd.xlane.f32.xlu0 %v1489_v9 }
0x1232   :  { %v1488_v40 = vpop.xlane.xlu1 %1487 }
0x1233   :  { %v1492_v41 = vmul.f32 0.03125, %v1488_v40 }
0x1234   :  { %v1491_v42 = vpop.xlane.xlu0 %1490 }
0x1235   :  { %v1494_v1 = vsub.f32 %v1484_v38, %v1492_v41  ;;  %v1493_v3 = vmul.f32 0.03125, %v1491_v42  ;;  %v4200_v42 = vld [vmem:[%s4463_s1 + $0x1] ss:$0 sm:$0xff] }
0x1237   :  { %v1495_v0 = vsub.f32 %v1485_v39, %v1493_v3  ;;  %v1496_v43 = vmul.f32 %v1494_v1, %v1494_v1 }
0x1239   :  { %v1498_v45 = vsel %vm164_vm7, %v1496_v43, 0.0  ;;  %v1497_v46 = vmul.f32 %v1495_v0, %v1495_v0 }
0x123a   :  { %1499 = vadd.xlane.f32.xlu1 %v1498_v45 }
0x123b   :  { %v1501_v47 = vsel %vm164_vm7, %v1497_v46, 0.0 }
0x123c   :  { %1502 = vadd.xlane.f32.xlu0 %v1501_v47 }
0x12c7   :  { %v1500_v50 = vpop.xlane.xlu1 %1499 }
0x12c8   :  { %v1504_v51 = vmul.f32 0.03125, %v1500_v50 }
0x12c9   :  { %v1503_v52 = vpop.xlane.xlu0 %1502 }
0x12ca   :  { %v1506_v53 = vadd.f32 1e-12, %v1504_v51  ;;  %v1505_v54 = vmul.f32 0.03125, %v1503_v52 }
0x12cc   :  { %3623 = vrsqrt.f32 %v1506_v53  ;;  %v1507_v56 = vadd.f32 1e-12, %v1505_v54 }
0x12ce   :  { %3625 = vrsqrt.f32 %v1507_v56 }
0x12d6   :  { %v3624_v8 = vpop.eup %3623 }
0x12d7   :  { %v1510_v10 = vmul.f32 %v3624_v8, %v1494_v1 }
0x12d8   :  { %v3626_v11 = vpop.eup %3625 }
0x12d9   :  { %v1516_v12 = vmul.f32 %v1515_v5, %v1510_v10  ;;  %v1511_v13 = vmul.f32 %v3626_v11, %v1495_v0 }
0x12db   :  { %v1517_v17 = vmul.f32 %v1515_v5, %v1511_v13  ;;  %v4156_v18 = vadd.f32 %v1521_v14, %v1516_v12 }
0x12dd   :  { %v4158_v19 = vadd.f32 %v1521_v14, %v1517_v17 }
0x12df   :  { %v1547_v4 = vpack.c.bf16 %v4158_v19, %v4156_v18 }
0x12e1   :  { %3341 = vmatmul.mubr.msk.bf16.vlgmr.msra.gmra.mrb[36].mxu0 %vm164_vm7, %v1547_v4 }
0x12e2   :  { %3346 = vmatprep.mubr.msk.bf16.mxu0 %vm3733_vm8, %v3732_v15 }
0x13b4   :  { %v1601_v22 = vpop.f32.mrb[36].mxu0 }
0x13b5   :  { %v1602_v23 = vadd.f32 %v1601_v22, %v1551_v21  ;;  %v3342_v25 = vpop.f32.mrb[37].mxu0 }
0x13b6   :  { %v1604_v26 = vpop.f32.mrb[38].mxu0 }
0x13b7   :  { %v4170_v27 = vpack.c.bf16 %v1602_v23, %v1602_v23  ;;  %v1605_v28 = vadd.f32 %v1604_v26, %v1551_v21  ;;  %v3343_v29 = vpop.f32.mrb[39].mxu0 }
0x13b9   :  { %v4172_v30 = vpack.c.bf16 %v1605_v28, %v1605_v28  ;;  %1611 = vrot.lane.b32.xlu1 %v4170_v27, %s3734_s3 }
0x13bb   :  { %1660 = vrot.lane.b32.xlu0 %v4172_v30, %s3734_s3 }
0x142b   :  { %v1612_v31 = vpop.permute.xlu1 %1611 }
0x142c   :  { %v1617_v32 = vsel %vm293_vm9, %v1612_v31, 0 }
0x142d   :  { %3345 = vmatpush3.bf16.xpose.msra.mxu0 %v1617_v32  ;;  %v1661_v63 = vpop.permute.xlu0 %1660 }
0x142e   :  { %v1666_v16 = vsel %vm293_vm9, %v1661_v63, 0  ;;  %3356 = vmatprep.subr.bf16.mxu0 %v3732_v15 }
0x142f   :  { %3351 = vmatpush3.bf16.xpose.msra.mxu1 %v1666_v16 }
0x1430   :  { %3362 = vmatprep.subr.bf16.mxu1 %v3732_v15 }
0x1434   :  { %3347 = vmatmul.mubr.msk.bf16.vlgmr.msra.gmra.mrb[40].mxu0 %vm293_vm9, %v4170_v27 }
0x1435   :  { %3358 = vmatprep.mubr.msk.bf16.mxu0 %vm3733_vm8, %v3732_v15 }
0x1436   :  { %3353 = vmatmul.mubr.msk.bf16.vlgmr.msra.gmra.mrb[48].mxu1 %vm293_vm9, %v4172_v30 }
0x1437   :  { %3364 = vmatprep.mubr.msk.bf16.mxu1 %vm3733_vm8, %v3732_v15 }
0x1507   :  { %v1653_v34 = vpop.f32.mrb[40].mxu0 }
0x1508   :  { %v1708_v35 = vmul.f32 0.35355338, %v1653_v34  ;;  %v3348_v36 = vpop.f32.mrb[41].mxu0 }
0x1509   :  { %v1656_v24 = vpop.f32.mrb[42].mxu0  ;;  %v1702_v37 = vpop.f32.mrb[48].mxu1 }
0x150a   :  { %v1709_v60 = vmul.f32 0.35355338, %v1702_v37  ;;  %v3349_v59 = vpop.f32.mrb[43].mxu0  ;;  %v3354_v38 = vpop.f32.mrb[49].mxu1  ;;  %v1710_v39 = vadd.f32 %v4193_v6, %v1708_v35 }
0x150b   :  { %v1705_v9 = vpop.f32.mrb[50].mxu1 }
0x150c   :  { %v3355_v40 = vpop.f32.mrb[51].mxu1  ;;  %v1712_v41 = vsel %vm293_vm9, %v1710_v39, -inf  ;;  %v1711_v1 = vadd.f32 %v4200_v42, %v1709_v60 }
0x150d   :  { %1713 = vmax.xlane.f32.xlu1 %v1712_v41 }
0x150e   :  { %v1715_v3 = vsel %vm293_vm9, %v1711_v1, -inf }
0x150f   :  { %1716 = vmax.xlane.f32.xlu0 %v1715_v3 }
0x151e   :  { %1736 = vrot.lane.b32.xlu1 %v4170_v27, %s3735_s0 }
0x159a   :  { %v1714_v0 = vpop.xlane.xlu1 %1713 }
0x159b   :  { %v1718_v43 = vsub.f32 %v1710_v39, %v1714_v0 }
0x159c   :  { %v1717_v45 = vpop.xlane.xlu0 %1716 }
0x159d   :  { %v1720_v46 = vmul.f32 1.442695, %v1718_v43  ;;  %v1719_v47 = vsub.f32 %v1711_v1, %v1717_v45 }
0x159e   :  { %v1737_v48 = vpop.permute.xlu1 %1736 }
0x159f   :  { %3627 = vpow2.f32 %v1720_v46  ;;  %v1722_v49 = vmul.f32 1.442695, %v1719_v47  ;;  %v1742_v50 = vsel %vm434_vm10, %v1737_v48, 0 }
0x15a0   :  { %3357 = vmatpush3.bf16.msra.mxu0 %v1742_v50 }
0x15a1   :  { %3629 = vpow2.f32 %v1722_v49  ;;  %3368 = vmatprep.subr.bf16.mxu0 %v3732_v15 }
0x15a9   :  { %v3628_v51 = vpop.eup %3627 }
0x15aa   :  { %v1724_v52 = vsel %vm293_vm9, %v3628_v51, 0.0 }
0x15ab   :  { %v3630_v53 = vpop.eup %3629  ;;  %1725 = vadd.xlane.f32.xlu1 %v1724_v52 }
0x15ac   :  { %v1727_v54 = vsel %vm293_vm9, %v3630_v53, 0.0 }
0x15ad   :  { %1728 = vadd.xlane.f32.xlu0 %v1727_v54 }
0x15bc   :  { %1834 = vrot.lane.b32.xlu1 %v4170_v27, %s3736_s26 }
0x15c0   :  { %1884 = vrot.lane.b32.xlu1 %v4172_v30, %s3736_s26 }
0x15c3   :  { %1784 = vrot.lane.b32.xlu0 %v4172_v30, %s3735_s0 }
0x15c4   :  { %1882 = vrot.lane.b32.xlu1 %v4172_v30, %s3737_s27 }
0x15c7   :  { %1832 = vrot.lane.b32.xlu0 %v4170_v27, %s3737_s27 }
0x1638   :  { %v1726_v56 = vpop.xlane.xlu1 %1725 }
0x1639   :  { %3631 = vrcp.f32 %v1726_v56 }
0x163a   :  { %v1729_v2 = vpop.xlane.xlu0 %1728 }
0x163b   :  { %3633 = vrcp.f32 %v1729_v2 }
0x163c   :  { %v1835_v10 = vpop.permute.xlu1 %1834 }
0x163d   :  { %v1840_v21 = vsel %vm293_vm9, %v1835_v10, 0 }
0x163e   :  { %v1785_v5 = vpop.permute.xlu0 %1784 }
0x163f   :  { %v1790_v8 = vsel %vm434_vm10, %v1785_v5, 0 }
0x1640   :  { %3363 = vmatpush3.bf16.msra.mxu1 %v1790_v8  ;;  %v1885_v4 = vpop.permute.xlu1 %1884 }
0x1641   :  { %3374 = vmatprep.subr.bf16.mxu1 %v3732_v15  ;;  %v1890_v23 = vsel %vm293_vm9, %v1885_v4, 0 }
0x1642   :  { %v1833_v25 = vpop.permute.xlu0 %1832 }
0x1643   :  { %v3632_v11 = vpop.eup %3631 }
0x1644   :  { %v1732_v12 = vmul.f32 %v3632_v11, %v3628_v51  ;;  %v1883_v26 = vpop.permute.xlu1 %1882 }
0x1645   :  { %v3634_v13 = vpop.eup %3633 }
0x1646   :  { %v1733_v14 = vmul.f32 %v3634_v13, %v3630_v53  ;;  %v1734_v17 = vpack.c.bf16 %v1732_v12, %v1732_v12 }
0x1648   :  { %3359 = vmatmul.mubr.msk.bf16.vlgmr.msra.gmra.mrb[44].mxu0 %vm293_vm9, %v1734_v17  ;;  %v1735_v22 = vpack.c.bf16 %v1733_v14, %v1733_v14 }
0x1649   :  { %3369 = vmatpush3.bf16.xpose.msra.mxu0 %v1840_v21  ;;  %3370 = vmatprep.mubr.msk.bf16.mxu0 %vm3733_vm8, %v3732_v15 }
0x164a   :  { %3365 = vmatmul.mubr.msk.bf16.vlgmr.msra.gmra.mrb[52].mxu1 %vm293_vm9, %v1735_v22  ;;  %3380 = vmatprep.subr.bf16.mxu0 %v3732_v15 }
0x164b   :  { %3375 = vmatpush3.bf16.xpose.msra.mxu1 %v1890_v23  ;;  %3376 = vmatprep.mubr.msk.bf16.mxu1 %vm3733_vm8, %v3732_v15 }
0x164c   :  { %3386 = vmatprep.subr.bf16.mxu1 %v3732_v15 }
0x1650   :  { %3371 = vmatmul.mubr.msk.bf16.vlgmr.msra.gmra.mrb[48].mxu0 %vm293_vm9, %v1833_v25 }
0x1651   :  { %3382 = vmatprep.mubr.msk.bf16.mxu0 %vm3733_vm8, %v3732_v15 }
0x1652   :  { %3377 = vmatmul.mubr.msk.bf16.vlgmr.msra.gmra.mrb[56].mxu1 %vm293_vm9, %v1883_v26 }
0x1653   :  { %3388 = vmatprep.mubr.msk.bf16.mxu1 %vm3733_vm8, %v3732_v15 }
0x171b   :  { %v4238_v28 = vpop.f32.mrb[44].mxu0 }
0x171c   :  { %v3360_v29 = vpop.f32.mrb[45].mxu0 }
0x171d   :  { %v1781_v31 = vpop.f32.mrb[46].mxu0  ;;  %v4240_v32 = vpop.f32.mrb[52].mxu1 }
0x171e   :  { %v3361_v63 = vpop.f32.mrb[47].mxu0  ;;  %v3366_v16 = vpop.f32.mrb[53].mxu1 }
0x171f   :  { %v1829_v34 = vpop.f32.mrb[54].mxu1 }
0x1720   :  { %v3367_v35 = vpop.f32.mrb[55].mxu1 }
0x1723   :  { %v1876_v36 = vpop.f32.mrb[48].mxu0 }
0x1724   :  { %v1932_v24 = vmul.f32 0.35355338, %v1876_v36  ;;  %v3372_v37 = vpop.f32.mrb[49].mxu0 }
0x1725   :  { %v1879_v60 = vpop.f32.mrb[50].mxu0  ;;  %v1926_v59 = vpop.f32.mrb[56].mxu1 }
0x1726   :  { %v1933_v38 = vmul.f32 0.35355338, %v1926_v59  ;;  %v3373_v39 = vpop.f32.mrb[51].mxu0  ;;  %v3378_v9 = vpop.f32.mrb[57].mxu1  ;;  %v1934_v40 = vadd.f32 %v4193_v6, %v1932_v24 }
0x1727   :  { %v1929_v41 = vpop.f32.mrb[58].mxu1 }
0x1728   :  { %v3379_v1 = vpop.f32.mrb[59].mxu1  ;;  %v1936_v3 = vsel %vm293_vm9, %v1934_v40, -inf  ;;  %v1935_v0 = vadd.f32 %v4200_v42, %v1933_v38 }
0x1729   :  { %1937 = vmax.xlane.f32.xlu0 %v1936_v3 }
0x172a   :  { %v1939_v43 = vsel %vm293_vm9, %v1935_v0, -inf }
0x172b   :  { %1940 = vmax.xlane.f32.xlu1 %v1939_v43 }
0x173c   :  { %1960 = vrot.lane.b32.xlu1 %v4170_v27, %s3738_s28 }
0x1740   :  { %2058 = vrot.lane.b32.xlu1 %v4170_v27, %s3739_s29 }
0x1744   :  { %2108 = vrot.lane.b32.xlu1 %v4172_v30, %s3739_s29 }
0x1748   :  { %2106 = vrot.lane.b32.xlu1 %v4172_v30, %s3740_s30 }
0x17b6   :  { %v1938_v45 = vpop.xlane.xlu0 %1937 }
0x17b7   :  { %v1942_v46 = vsub.f32 %v1934_v40, %v1938_v45 }
0x17b8   :  { %v1941_v47 = vpop.xlane.xlu1 %1940 }
0x17b9   :  { %v1944_v48 = vmul.f32 1.442695, %v1942_v46  ;;  %v1943_v49 = vsub.f32 %v1935_v0, %v1941_v47 }
0x17bb   :  { %3635 = vpow2.f32 %v1944_v48  ;;  %v1946_v50 = vmul.f32 1.442695, %v1943_v49 }
0x17bc   :  { %v1961_v51 = vpop.permute.xlu1 %1960 }
0x17bd   :  { %3637 = vpow2.f32 %v1946_v50  ;;  %v1966_v52 = vsel %vm434_vm10, %v1961_v51, 0 }
0x17be   :  { %3381 = vmatpush3.bf16.msra.mxu0 %v1966_v52 }
0x17bf   :  { %3392 = vmatprep.subr.bf16.mxu0 %v3732_v15 }
0x17c0   :  { %v2059_v13 = vpop.permute.xlu1 %2058 }
0x17c1   :  { %v2064_v21 = vsel %vm293_vm9, %v2059_v13, 0 }
0x17c4   :  { %v2109_v23 = vpop.permute.xlu1 %2108 }
0x17c5   :  { %v3636_v53 = vpop.eup %3635  ;;  %v2114_v26 = vsel %vm293_vm9, %v2109_v23, 0 }
0x17c6   :  { %v1948_v54 = vsel %vm293_vm9, %v3636_v53, 0.0 }
0x17c7   :  { %v3638_v56 = vpop.eup %3637  ;;  %1949 = vadd.xlane.f32.xlu0 %v1948_v54 }
0x17c8   :  { %v1951_v2 = vsel %vm293_vm9, %v3638_v56, 0.0  ;;  %v2107_v31 = vpop.permute.xlu1 %2106 }
0x17cb   :  { %1952 = vadd.xlane.f32.xlu0 %v1951_v2 }
0x17e1   :  { %2008 = vrot.lane.b32.xlu0 %v4172_v30, %s3738_s28 }
0x17e5   :  { %2056 = vrot.lane.b32.xlu0 %v4170_v27, %s3740_s30 }
0x1854   :  { %v1950_v5 = vpop.xlane.xlu0 %1949 }
0x1855   :  { %3639 = vrcp.f32 %v1950_v5 }
0x1858   :  { %v1953_v8 = vpop.xlane.xlu0 %1952 }
0x1859   :  { %3641 = vrcp.f32 %v1953_v8 }
0x185c   :  { %v2009_v10 = vpop.permute.xlu0 %2008 }
0x185d   :  { %v2014_v11 = vsel %vm434_vm10, %v2009_v10, 0 }
0x185e   :  { %3387 = vmatpush3.bf16.msra.mxu1 %v2014_v11 }
0x185f   :  { %v3640_v12 = vpop.eup %3639  ;;  %3398 = vmatprep.subr.bf16.mxu1 %v3732_v15 }
0x1860   :  { %v1956_v14 = vmul.f32 %v3640_v12, %v3636_v53  ;;  %v2057_v29 = vpop.permute.xlu0 %2056 }
0x1862   :  { %v1958_v17 = vpack.c.bf16 %v1956_v14, %v1956_v14 }
0x1863   :  { %v3642_v4 = vpop.eup %3641 }
0x1864   :  { %v1957_v22 = vmul.f32 %v3642_v4, %v3638_v56  ;;  %3383 = vmatmul.mubr.msk.bf16.vlgmr.msra.gmra.mrb[52].mxu0 %vm293_vm9, %v1958_v17 }
0x1865   :  { %3393 = vmatpush3.bf16.xpose.msra.mxu0 %v2064_v21  ;;  %3394 = vmatprep.mubr.msk.bf16.mxu0 %vm3733_vm8, %v3732_v15 }
0x1866   :  { %v1959_v25 = vpack.c.bf16 %v1957_v22, %v1957_v22  ;;  %3404 = vmatprep.subr.bf16.mxu0 %v3732_v15 }
0x1868   :  { %3389 = vmatmul.mubr.msk.bf16.vlgmr.msra.gmra.mrb[60].mxu1 %vm293_vm9, %v1959_v25 }
0x1869   :  { %3399 = vmatpush3.bf16.xpose.msra.mxu1 %v2114_v26  ;;  %3400 = vmatprep.mubr.msk.bf16.mxu1 %vm3733_vm8, %v3732_v15 }
0x186a   :  { %3410 = vmatprep.subr.bf16.mxu1 %v3732_v15 }
0x186c   :  { %3395 = vmatmul.mubr.msk.bf16.vlgmr.msra.gmra.mrb[56].mxu0 %vm293_vm9, %v2057_v29 }
0x186d   :  { %3406 = vmatprep.mubr.msk.bf16.mxu0 %vm3733_vm8, %v3732_v15 }
0x1870   :  { %3401 = vmatmul.mubr.msk.bf16.vlgmr.msra.gmra.mrb[64].mxu1 %vm293_vm9, %v2107_v31 }
0x1871   :  { %3412 = vmatprep.mubr.msk.bf16.mxu1 %vm3733_vm8, %v3732_v15 }
0x1937   :  { %v4280_v63 = vpop.f32.mrb[52].mxu0 }
0x1938   :  { %v3384_v16 = vpop.f32.mrb[53].mxu0 }
0x1939   :  { %v2005_v34 = vpop.f32.mrb[54].mxu0 }
0x193a   :  { %v3385_v35 = vpop.f32.mrb[55].mxu0 }
0x193b   :  { %v4282_v36 = vpop.f32.mrb[60].mxu1 }
0x193c   :  { %v3542_v24 = vpack.i.bf16 %v4282_v36, %v4280_v63  ;;  %v3390_v37 = vpop.f32.mrb[61].mxu1 }
0x193d   :  { %v2053_v60 = vpop.f32.mrb[62].mxu1 }
0x193e   :  { %v3391_v59 = vpop.f32.mrb[63].mxu1 }
0x193f   :  { %v2100_v38 = vpop.f32.mrb[56].mxu0 }
0x1940   :  { %v2156_v39 = vmul.f32 0.35355338, %v2100_v38  ;;  %v3396_v9 = vpop.f32.mrb[57].mxu0 }
0x1941   :  { %v2103_v40 = vpop.f32.mrb[58].mxu0 }
0x1942   :  { %v3397_v41 = vpop.f32.mrb[59].mxu0  ;;  %v2158_v1 = vadd.f32 %v4193_v6, %v2156_v39 }
0x1943   :  { %v2150_v3 = vpop.f32.mrb[64].mxu1 }
0x1944   :  { %v2157_v0 = vmul.f32 0.35355338, %v2150_v3  ;;  %v3402_v43 = vpop.f32.mrb[65].mxu1  ;;  %v2160_v45 = vsel %vm293_vm9, %v2158_v1, -inf }
0x1945   :  { %2161 = vmax.xlane.f32.xlu0 %v2160_v45  ;;  %v2153_v46 = vpop.f32.mrb[66].mxu1 }
0x1946   :  { %v3403_v47 = vpop.f32.mrb[67].mxu1  ;;  %v2159_v48 = vadd.f32 %v4200_v42, %v2157_v0 }
0x1948   :  { %v2163_v49 = vsel %vm293_vm9, %v2159_v48, -inf }
0x1949   :  { %2164 = vmax.xlane.f32.xlu1 %v2163_v49 }
0x195a   :  { %2184 = vrot.lane.b32.xlu1 %v4170_v27, %s3741_s8 }
0x195e   :  { %2282 = vrot.lane.b32.xlu1 %v4170_v27, %s3742_s9 }
0x1962   :  { %2332 = vrot.lane.b32.xlu1 %v4172_v30, %s3742_s9 }
0x1966   :  { %2330 = vrot.lane.b32.xlu1 %v4172_v30, %s3743_s10 }
0x19d2   :  { %v2162_v50 = vpop.xlane.xlu0 %2161 }
0x19d3   :  { %v2166_v51 = vsub.f32 %v2158_v1, %v2162_v50 }
0x19d5   :  { %v2168_v52 = vmul.f32 1.442695, %v2166_v51 }
0x19d6   :  { %v2165_v53 = vpop.xlane.xlu1 %2164 }
0x19d7   :  { %3643 = vpow2.f32 %v2168_v52  ;;  %v2167_v54 = vsub.f32 %v2159_v48, %v2165_v53 }
0x19d9   :  { %v2170_v56 = vmul.f32 1.442695, %v2167_v54 }
0x19da   :  { %v2185_v2 = vpop.permute.xlu1 %2184 }
0x19db   :  { %3645 = vpow2.f32 %v2170_v56  ;;  %v2190_v5 = vsel %vm434_vm10, %v2185_v2, 0 }
0x19dc   :  { %3405 = vmatpush3.bf16.msra.mxu0 %v2190_v5 }
0x19dd   :  { %3416 = vmatprep.subr.bf16.mxu0 %v3732_v15 }
0x19de   :  { %v2283_v22 = vpop.permute.xlu1 %2282 }
0x19df   :  { %v2288_v29 = vsel %vm293_vm9, %v2283_v22, 0 }
0x19e1   :  { %v3644_v8 = vpop.eup %3643 }
0x19e2   :  { %v2172_v10 = vsel %vm293_vm9, %v3644_v8, 0.0  ;;  %v2333_v16 = vpop.permute.xlu1 %2332 }
0x19e3   :  { %2173 = vadd.xlane.f32.xlu0 %v2172_v10  ;;  %v2338_v35 = vsel %vm293_vm9, %v2333_v16, 0  ;;  %v3571_v16 = vld [vmem:[%s4466_s4 + $0x60] sm:$0xff]  }
0x19e5   :  { %v3646_v11 = vpop.eup %3645 }
0x19e6   :  { %v2175_v12 = vsel %vm293_vm9, %v3646_v11, 0.0  ;;  %v2331_v60 = vpop.permute.xlu1 %2330 }
0x19e7   :  { %2176 = vadd.xlane.f32.xlu0 %v2175_v12 }
0x19fd   :  { %2232 = vrot.lane.b32.xlu0 %v4172_v30, %s3741_s8 }
0x1a01   :  { %2280 = vrot.lane.b32.xlu0 %v4170_v27, %s3743_s10 }
0x1a70   :  { %v2174_v13 = vpop.xlane.xlu0 %2173 }
0x1a71   :  { %3647 = vrcp.f32 %v2174_v13 }
0x1a74   :  { %v2177_v14 = vpop.xlane.xlu0 %2176 }
0x1a75   :  { %3649 = vrcp.f32 %v2177_v14 }
0x1a78   :  { %v2233_v17 = vpop.permute.xlu0 %2232 }
0x1a79   :  { %v2238_v4 = vsel %vm434_vm10, %v2233_v17, 0 }
0x1a7a   :  { %3411 = vmatpush3.bf16.msra.mxu1 %v2238_v4 }
0x1a7b   :  { %v3648_v21 = vpop.eup %3647  ;;  %3422 = vmatprep.subr.bf16.mxu1 %v3732_v15 }
0x1a7c   :  { %v2180_v23 = vmul.f32 %v3648_v21, %v3644_v8  ;;  %v2281_v37 = vpop.permute.xlu0 %2280 }
0x1a7e   :  { %v2182_v25 = vpack.c.bf16 %v2180_v23, %v2180_v23 }
0x1a7f   :  { %v3650_v26 = vpop.eup %3649 }
0x1a80   :  { %v2181_v31 = vmul.f32 %v3650_v26, %v3646_v11  ;;  %3407 = vmatmul.mubr.msk.bf16.vlgmr.msra.gmra.mrb[60].mxu0 %vm293_vm9, %v2182_v25 }
0x1a81   :  { %3417 = vmatpush3.bf16.xpose.msra.mxu0 %v2288_v29  ;;  %3418 = vmatprep.mubr.msk.bf16.mxu0 %vm3733_vm8, %v3732_v15 }
0x1a82   :  { %v2183_v34 = vpack.c.bf16 %v2181_v31, %v2181_v31  ;;  %3428 = vmatprep.subr.bf16.mxu0 %v3732_v15 }
0x1a84   :  { %3413 = vmatmul.mubr.msk.bf16.vlgmr.msra.gmra.mrb[68].mxu1 %vm293_vm9, %v2183_v34  ;;  %v3572_v34 = vld [vmem:[%s4466_s4 + $0x68] sm:$0xff]  }
0x1a85   :  { %3423 = vmatpush3.bf16.xpose.msra.mxu1 %v2338_v35  ;;  %3424 = vmatprep.mubr.msk.bf16.mxu1 %vm3733_vm8, %v3732_v15 }
0x1a86   :  { %3434 = vmatprep.subr.bf16.mxu1 %v3732_v15 }
0x1a88   :  { %3419 = vmatmul.mubr.msk.bf16.vlgmr.msra.gmra.mrb[64].mxu0 %vm293_vm9, %v2281_v37 }
0x1a89   :  { %3430 = vmatprep.mubr.msk.bf16.mxu0 %vm3733_vm8, %v3732_v15 }
0x1a8c   :  { %3425 = vmatmul.mubr.msk.bf16.vlgmr.msra.gmra.mrb[72].mxu1 %vm293_vm9, %v2331_v60 }
0x1a8d   :  { %3436 = vmatprep.mubr.msk.bf16.mxu1 %vm3733_vm8, %v3732_v15 }
0x1b53   :  { %v2226_v59 = vpop.f32.mrb[60].mxu0 }
0x1b54   :  { %v3408_v38 = vpop.f32.mrb[61].mxu0 }
0x1b55   :  { %v2229_v39 = vpop.f32.mrb[62].mxu0 }
0x1b56   :  { %v3409_v9 = vpop.f32.mrb[63].mxu0 }
0x1b57   :  { %v2274_v40 = vpop.f32.mrb[68].mxu1 }
0x1b58   :  { %v3547_v41 = vpack.i.bf16 %v2274_v40, %v2226_v59  ;;  %v3414_v1 = vpop.f32.mrb[69].mxu1 }
0x1b59   :  { %v2277_v3 = vpop.f32.mrb[70].mxu1 }
0x1b5a   :  { %v3415_v0 = vpop.f32.mrb[71].mxu1 }
0x1b5b   :  { %v2324_v43 = vpop.f32.mrb[64].mxu0 }
0x1b5c   :  { %v2380_v45 = vmul.f32 0.35355338, %v2324_v43  ;;  %v3420_v46 = vpop.f32.mrb[65].mxu0 }
0x1b5d   :  { %v2327_v47 = vpop.f32.mrb[66].mxu0 }
0x1b5e   :  { %v3421_v48 = vpop.f32.mrb[67].mxu0  ;;  %v2382_v49 = vadd.f32 %v4193_v6, %v2380_v45 }
0x1b5f   :  { %v2374_v50 = vpop.f32.mrb[72].mxu1 }
0x1b60   :  { %v2381_v51 = vmul.f32 0.35355338, %v2374_v50  ;;  %v3426_v52 = vpop.f32.mrb[73].mxu1  ;;  %v2384_v53 = vsel %vm293_vm9, %v2382_v49, -inf }
0x1b61   :  { %2385 = vmax.xlane.f32.xlu0 %v2384_v53  ;;  %v2377_v54 = vpop.f32.mrb[74].mxu1 }
0x1b62   :  { %v3427_v56 = vpop.f32.mrb[75].mxu1  ;;  %v2383_v2 = vadd.f32 %v4200_v42, %v2381_v51 }
0x1b64   :  { %v2387_v5 = vsel %vm293_vm9, %v2383_v2, -inf }
0x1b65   :  { %2388 = vmax.xlane.f32.xlu1 %v2387_v5 }
0x1b76   :  { %2408 = vrot.lane.b32.xlu1 %v4170_v27, %s3744_s11 }
0x1b7a   :  { %3543 = vrot.lane.b32.xlu1 %v3542_v24, %s3729_s12  ;;  %s3748_s12 = smov [#allocation5]  }
0x1b7b   :  { %s2976_s0 = sshll.u32 %s3748_s12, 4  ;;  %s2977_s0 = int_to_ptr.vmem [resolvable:$true] %s2976_s0 }
0x1b7c   :  { %s3701_s26 = scalar_lea.vmem %s2977_s0, 32  ;;  %p3706_p9 = scmp.lt.s32.totalorder %s2977_s0, %s2977_s0 }
0x1b7d   :  { %p3702_p8 = scmp.ne.s32.totalorder %s2977_s0, %s3701_s26  ;;  %p3707_p10 = scmp.lt.s32.totalorder %s3701_s26, %s3701_s26 }
0x1b7e   :  { %3548 = vrot.lane.b32.xlu1 %v3547_v41, %s3745_s13 }
0x1b7f   :  { %p3708_p11 = por %p3707_p10, %p3706_p9 }
0x1b81   :  { %p3709_p12 = pnand %p3708_p11, %p3702_p8 }
0x1bee   :  { %v2386_v6 = vpop.xlane.xlu0 %2385 }
0x1bef   :  { %v2390_v8 = vsub.f32 %v2382_v49, %v2386_v6 }
0x1bf1   :  { %v2392_v10 = vmul.f32 1.442695, %v2390_v8 }
0x1bf2   :  { %v2389_v11 = vpop.xlane.xlu1 %2388 }
0x1bf3   :  { %3651 = vpow2.f32 %v2392_v10  ;;  %v2391_v12 = vsub.f32 %v2383_v2, %v2389_v11 }
0x1bf5   :  { %v2394_v42 = vmul.f32 1.442695, %v2391_v12 }
0x1bf6   :  { %v2409_v13 = vpop.permute.xlu1 %2408 }
0x1bf7   :  { %3653 = vpow2.f32 %v2394_v42  ;;  %v2414_v14 = vsel %vm434_vm10, %v2409_v13, 0 }
0x1bf8   :  { %3429 = vmatpush3.bf16.msra.mxu0 %v2414_v14 }
0x1bf9   :  { %3440 = vmatprep.subr.bf16.mxu0 %v3732_v15 }
0x1bfa   :  { %v3544_v1 = vpop.permute.xlu1 %3543 }
0x1bfb   :  { %v3546_v0 = vunpack.i.h.bf16 %v3544_v1  ;;  %v3545_v43 = vunpack.i.l.bf16 %v3544_v1 }
0x1bfd   :  { %v3652_v27 = vpop.eup %3651  ;;  %v2529_v48 = vsel %vm293_vm9, %v4240_v32, %v3546_v0  ;;  %v2528_v49 = vsel %vm293_vm9, %v4238_v28, %v3545_v43  ;;  %v2538_v28 = vrot.slane %v4165_v20, %v1233_v61  ;;  %v3578_v0 = vld [vmem:[%s4466_s4 + $0x98] sm:$0xff]   ;;  %v2639_v43 = vrot.slane %v4165_v20, %v1334_v58 }
0x1bfe   :  { %v2396_v63 = vsel %vm293_vm9, %v3652_v27, 0.0  ;;  %v3549_v3 = vpop.permute.xlu1 %3548 }
0x1bff   :  { %2397 = vadd.xlane.f32.xlu0 %v2396_v63  ;;  %v3551_v45 = vunpack.i.h.bf16 %v3549_v3  ;;  %v3550_v46 = vunpack.i.l.bf16 %v3549_v3  ;;  %v3575_v3 = vld [vmem:[%s4466_s4 + $0x80] sm:$0xff]  }
0x1c01   :  { %v3654_v36 = vpop.eup %3653  ;;  %v2530_v52 = vsel %vm1224_vm11, %v2528_v49, %v3550_v46  ;;  %v2531_v53 = vsel %vm1224_vm11, %v2529_v48, %v3551_v45 }
0x1c02   :  { %v2399_v24 = vsel %vm293_vm9, %v3654_v36, 0.0 }
0x1c03   :  { %2400 = vadd.xlane.f32.xlu0 %v2399_v24 }
0x1c19   :  { %2456 = vrot.lane.b32.xlu0 %v4172_v30, %s3744_s11 }
0x1c8c   :  { %v2398_v17 = vpop.xlane.xlu0 %2397 }
0x1c8d   :  { %3655 = vrcp.f32 %v2398_v17 }
0x1c90   :  { %v2401_v4 = vpop.xlane.xlu0 %2400 }
0x1c91   :  { %3657 = vrcp.f32 %v2401_v4 }
0x1c94   :  { %v2457_v21 = vpop.permute.xlu0 %2456 }
0x1c95   :  { %v2462_v22 = vsel %vm434_vm10, %v2457_v21, 0 }
0x1c96   :  { %3435 = vmatpush3.bf16.msra.mxu1 %v2462_v22 }
0x1c97   :  { %v3656_v23 = vpop.eup %3655  ;;  %3448 = vmatprep.subr.bf16.mxu1 %v3732_v15 }
0x1c98   :  { %v2404_v25 = vmul.f32 %v3656_v23, %v3652_v27  ;;  %v3574_v23 = vld [vmem:[%s4466_s4 + $0x78] sm:$0xff]  }
0x1c9a   :  { %v2406_v26 = vpack.c.bf16 %v2404_v25, %v2404_v25 }
0x1c9b   :  { %v3658_v29 = vpop.eup %3657 }
0x1c9c   :  { %v2405_v31 = vmul.f32 %v3658_v29, %v3654_v36  ;;  %3431 = vmatmul.mubr.msk.bf16.vlgmr.msra.gmra.mrb[68].mxu0 %vm293_vm9, %v2406_v26 }
0x1c9d   :  { %3444 = vmatprep.mubr.msk.bf16.mxu0 %vm3733_vm8, %v3732_v15  ;;  %3441 = vmatpush3.bf16.msra.mxu0 %v3571_v16 }
0x1c9e   :  { %v2407_v30 = vpack.c.bf16 %v2405_v31, %v2405_v31  ;;  %3442 = vmatprep.subr.bf16.mxu0 %v3732_v15 }
0x1ca0   :  { %3437 = vmatmul.mubr.msk.bf16.vlgmr.msra.gmra.mrb[76].mxu1 %vm293_vm9, %v2407_v30 }
0x1ca1   :  { %3452 = vmatprep.mubr.msk.bf16.mxu1 %vm3733_vm8, %v3732_v15  ;;  %3443 = vmatpush3.bf16.msra.mxu0 %v3572_v34  ;;  %v2626_v34 = vrot.slane %v4165_v20, %v1321_v55  ;;  %v3576_v55 = vld [vmem:[%s4466_s4 + $0x88] sm:$0xff]  }
0x1ca2   :  { %3456 = vmatprep.subr.bf16.mxu0 %v3732_v15 }
0x1d6f   :  { %v2450_v35 = vpop.f32.mrb[68].mxu0 }
0x1d70   :  { %v3432_v37 = vpop.f32.mrb[69].mxu0 }
0x1d71   :  { %v2453_v60 = vpop.f32.mrb[70].mxu0 }
0x1d72   :  { %v3433_v59 = vpop.f32.mrb[71].mxu0 }
0x1d73   :  { %v2498_v38 = vpop.f32.mrb[76].mxu1 }
0x1d74   :  { %v3552_v39 = vpack.i.bf16 %v2498_v38, %v2450_v35  ;;  %v3438_v9 = vpop.f32.mrb[77].mxu1 }
0x1d75   :  { %v2501_v40 = vpop.f32.mrb[78].mxu1 }
0x1d76   :  { %3553 = vrot.lane.b32.xlu0 %v3552_v39, %s3746_s18  ;;  %v3439_v41 = vpop.f32.mrb[79].mxu1  ;;  %v2632_v39 = vrot.slane %v4165_v20, %v1327_v44  ;;  %v3577_v44 = vld [vmem:[%s4466_s4 + $0x90] sm:$0xff]  }
0x1de8   :  { %v3554_v47 = vpop.permute.xlu0 %3553 }
0x1de9   :  { %v3556_v50 = vunpack.i.h.bf16 %v3554_v47  ;;  %v3555_v51 = vunpack.i.l.bf16 %v3554_v47 }
0x1deb   :  { %v2533_v54 = vsel %vm1227_vm12, %v2531_v53, %v3556_v50  ;;  %v2532_v56 = vsel %vm1227_vm12, %v2530_v52, %v3555_v51 }
0x1dec   :  { %v2534_v2 = vpack.c.bf16 %v2533_v54, %v2532_v56 }
0x1dee   :  { %3445 = vmatmul.mubr.msk.bf16.vlgmr.msra.gmra.mrb[72].mxu0 %vm164_vm7, %v2534_v2 }
0x1def   :  { %3464 = vmatprep.mubr.msk.bf16.mxu0 %vm3733_vm8, %v3732_v15  ;;  %3457 = vmatpush3.bf16.msra.mxu0 %v3575_v3 }
0x1df0   :  { %3458 = vmatprep.subr.bf16.mxu0 %v3732_v15 }
0x1df3   :  { %3459 = vmatpush3.bf16.msra.mxu0 %v3576_v55 }
0x1df4   :  { %3460 = vmatprep.subr.bf16.mxu0 %v3732_v15 }
0x1df7   :  { %3461 = vmatpush3.bf16.msra.mxu0 %v3577_v44 }
0x1df8   :  { %3462 = vmatprep.subr.bf16.mxu0 %v3732_v15 }
0x1dfb   :  { %3463 = vmatpush3.bf16.msra.mxu0 %v3578_v0 }
0x1ec1   :  { %v2588_v32 = vpop.f32.mrb[72].mxu0 }
0x1ec2   :  { %v2589_v5 = vadd.f32 %v2588_v32, %v2538_v28  ;;  %v3446_v6 = vpop.f32.mrb[73].mxu0 }
0x1ec3   :  { %v2591_v8 = vpop.f32.mrb[74].mxu0 }
0x1ec4   :  { %v2595_v10 = vadd.f32 %v2589_v5, %v4156_v18  ;;  %v2592_v11 = vadd.f32 %v2591_v8, %v2538_v28  ;;  %v3447_v12 = vpop.f32.mrb[75].mxu0 }
0x1ec6   :  { %v2596_v42 = vadd.f32 %v2592_v11, %v4158_v19  ;;  %v2597_v13 = vsel %vm164_vm7, %v2595_v10, 0.0  ;;  %v3573_v19 = vld [vmem:[%s4466_s4 + $0x70] sm:$0xff]  }
0x1ec7   :  { %2598 = vadd.xlane.f32.xlu1 %v2597_v13  ;;  %3449 = vmatpush3.bf16.msra.mxu1 %v3573_v19 }
0x1ec8   :  { %v2600_v14 = vsel %vm164_vm7, %v2596_v42, 0.0  ;;  %3450 = vmatprep.subr.bf16.mxu1 %v3732_v15 }
0x1ec9   :  { %2601 = vadd.xlane.f32.xlu0 %v2600_v14 }
0x1ecb   :  { %3451 = vmatpush3.bf16.msra.mxu1 %v3574_v23 }
0x1f54   :  { %v2599_v27 = vpop.xlane.xlu1 %2598 }
0x1f55   :  { %v2603_v63 = vmul.f32 0.03125, %v2599_v27 }
0x1f56   :  { %v2602_v36 = vpop.xlane.xlu0 %2601 }
0x1f57   :  { %v2605_v61 = vsub.f32 %v2595_v10, %v2603_v63  ;;  %v2604_v24 = vmul.f32 0.03125, %v2602_v36  ;;  %v2718_v63 = vrot.slane %v4165_v20, %v1413_v33  ;;  %v2827_v36 = vld [vmem:[%s4464_s2] sm:$0xff] }
0x1f59   :  { %v2606_v17 = vsub.f32 %v2596_v42, %v2604_v24  ;;  %v2607_v4 = vmul.f32 %v2605_v61, %v2605_v61 }
0x1f5b   :  { %v2609_v21 = vsel %vm164_vm7, %v2607_v4, 0.0  ;;  %v2608_v18 = vmul.f32 %v2606_v17, %v2606_v17 }
0x1f5c   :  { %2610 = vadd.xlane.f32.xlu0 %v2609_v21  ;;  %v2856_v21 = vsel %vm2855_vm14, %v2827_v36, 0.0 }
0x1f5d   :  { %v2612_v22 = vsel %vm164_vm7, %v2608_v18, 0.0 }
0x1f5e   :  { %2613 = vadd.xlane.f32.xlu1 %v2612_v22 }
0x1fe9   :  { %v2611_v25 = vpop.xlane.xlu0 %2610 }
0x1fea   :  { %v2615_v26 = vmul.f32 0.03125, %v2611_v25  ;;  %v2857_v25 = vrot.slane %v2856_v21, 4 }
0x1feb   :  { %v2614_v29 = vpop.xlane.xlu1 %2613 }
0x1fec   :  { %v2617_v31 = vadd.f32 1e-12, %v2615_v26  ;;  %v2616_v30 = vmul.f32 0.03125, %v2614_v29  ;;  %v2858_v20 = vadd.f32 %v2857_v25, %v2856_v21 }
0x1fee   :  { %3659 = vrsqrt.f32 %v2617_v31  ;;  %v2618_v16 = vadd.f32 1e-12, %v2616_v30  ;;  %v2859_v26 = vrot.slane %v2858_v20, 2  ;;  %v2828_v30 = vld [vmem:[%s4464_s2 + $0x8] sm:$0xff] }
0x1ff0   :  { %3661 = vrsqrt.f32 %v2618_v16  ;;  %v2860_v29 = vadd.f32 %v2859_v26, %v2858_v20 }
0x1ff2   :  { %v2861_v31 = vrot.slane %v2860_v29, 1 }
0x1ff4   :  { %v2862_v16 = vadd.f32 %v2861_v31, %v2860_v29 }
0x1ff8   :  { %v3660_v35 = vpop.eup %3659 }
0x1ff9   :  { %v2621_v37 = vmul.f32 %v3660_v35, %v2605_v61 }
0x1ffa   :  { %v3662_v60 = vpop.eup %3661 }
0x1ffb   :  { %v2627_v59 = vmul.f32 %v2626_v34, %v2621_v37  ;;  %v2622_v38 = vmul.f32 %v3662_v60, %v2606_v17 }
0x1ffd   :  { %v2628_v9 = vmul.f32 %v2626_v34, %v2622_v38  ;;  %v2633_v40 = vadd.f32 %v2632_v39, %v2627_v59  ;;  %v2863_v34 = vsel %vm2855_vm14, %v2828_v30, 0.0 }
0x1ffe   :  { %v2864_v59 = vrot.slane %v2863_v34, 4 }
0x1fff   :  { %v2634_v41 = vadd.f32 %v2632_v39, %v2628_v9 }
0x2001   :  { %v2635_v1 = vpack.c.bf16 %v2634_v41, %v2633_v40 }
0x2003   :  { %3453 = vmatmul.mubr.msk.bf16.vlgmr.msra.gmra.mrb[80].mxu1 %vm164_vm7, %v2635_v1 }
0x20d6   :  { %v2689_v45 = vpop.f32.mrb[80].mxu1 }
0x20d7   :  { %v2690_v46 = vadd.f32 %v2689_v45, %v2639_v43  ;;  %v3454_v47 = vpop.f32.mrb[81].mxu1 }
0x20d8   :  { %v2692_v48 = vpop.f32.mrb[82].mxu1  ;;  %v2885_v47 = vld [vmem:[%s4468_s6 + $0x8] sm:$0xff] }
0x20d9   :  { %v2698_v49 = vmul.f32 0.044715, %v2690_v46  ;;  %v2693_v50 = vadd.f32 %v2692_v48, %v2639_v43  ;;  %v3455_v51 = vpop.f32.mrb[83].mxu1  ;;  %v2696_v11 = vmul.f32 0.5, %v2690_v46 }
0x20da   :  { %v2887_v51 = vld [vmem:[%s4468_s6 + $0x18] sm:$0xff] }
0x20db   :  { %v2700_v52 = vmul.f32 %v2698_v49, %v2690_v46  ;;  %v2699_v53 = vmul.f32 0.044715, %v2693_v50  ;;  %v2697_v12 = vmul.f32 0.5, %v2693_v50  ;;  %v3747_v49 = vmov 0.0|0.0  }
0x20dc   :  { %3495 = vmatprep.subr.bf16.mxu0 %v3747_v49 }
0x20dd   :  { %v2702_v54 = vmul.f32 %v2700_v52, %v2690_v46  ;;  %v2701_v56 = vmul.f32 %v2699_v53, %v2693_v50 }
0x20df   :  { %v2704_v2 = vadd.f32 %v2702_v54, %v2690_v46  ;;  %v2703_v28 = vmul.f32 %v2701_v56, %v2693_v50  ;;  %v2884_v46 = vld [vmem:[%s4468_s6] sm:$0xff] }
0x20e0   :  { %v3496_v48 = vpack.c.bf16 %v2885_v47, %v2884_v46 }
0x20e1   :  { %v2706_v32 = vmul.f32 0.7978846, %v2704_v2  ;;  %v2705_v5 = vadd.f32 %v2703_v28, %v2693_v50  ;;  %v2886_v50 = vld [vmem:[%s4468_s6 + $0x10] sm:$0xff] }
0x20e2   :  { %v3499_v52 = vpack.c.bf16 %v2887_v51, %v2886_v50 }
0x20e3   :  { %3663 = vtanh.f32 %v2706_v32  ;;  %v2707_v6 = vmul.f32 0.7978846, %v2705_v5 }
0x20e5   :  { %3665 = vtanh.f32 %v2707_v6 }
0x20ed   :  { %v3664_v8 = vpop.eup %3663 }
0x20ee   :  { %v2710_v58 = vadd.f32 1.0, %v3664_v8  ;;  %v3678_v8 = vld [vmem:[#allocation2 + $0x8] sm:$0xff] }
0x20ef   :  { %v3666_v10 = vpop.eup %3665 }
0x20f0   :  { %v2711_v42 = vadd.f32 1.0, %v3666_v10  ;;  %v2712_v13 = vmul.f32 %v2710_v58, %v2696_v11  ;;  %v2818_v58 = vrot.slane %v3678_v8, %v1514_v57 }
0x20f2   :  { %v2713_v14 = vmul.f32 %v2711_v42, %v2697_v12  ;;  %v2824_v12 = vrot.slane %v3678_v8, %v1520_v7 }
0x20f4   :  { %v2714_v27 = vpack.c.bf16 %v2713_v14, %v2712_v13 }
0x20f6   :  { %3465 = vmatmul.mubr.msk.bf16.vlgmr.msra.gmra.mrb[76].mxu0 %vm1439_vm13, %v2714_v27 }
0x20f7   :  { %3476 = vmatprep.mubr.msk.f32.mxu0 %vm3733_vm8, %v3732_v15  ;;  %3497 = vmatpush3.bf16.msra.mxu0 %v3496_v48 }
0x20f8   :  { %3498 = vmatprep.subr.bf16.mxu0 %v3747_v49 }
0x20fb   :  { %3500 = vmatpush3.bf16.msra.mxu0 %v3499_v52 }
0x21c9   :  { %v2780_v61 = vpop.f32.mrb[76].mxu0 }
0x21ca   :  { %v2781_v24 = vadd.f32 %v2780_v61, %v2718_v63  ;;  %v3466_v17 = vpop.f32.mrb[77].mxu0 }
0x21cb   :  { %v2783_v4 = vpop.f32.mrb[78].mxu0 }
0x21cc   :  { %v2787_v18 = vadd.f32 %v2781_v24, %v2633_v40  ;;  %v2784_v22 = vadd.f32 %v2783_v4, %v2718_v63  ;;  %v3467_v19 = vpop.f32.mrb[79].mxu0 }
0x21ce   :  { %v2788_v23 = vadd.f32 %v2784_v22, %v2634_v41  ;;  %v2789_v15 = vsel %vm164_vm7, %v2787_v18, 0.0  ;;  %v2865_v41 = vadd.f32 %v2864_v59, %v2863_v34 }
0x21cf   :  { %2790 = vadd.xlane.f32.xlu0 %v2789_v15 }
0x21d0   :  { %v2792_v33 = vsel %vm164_vm7, %v2788_v23, 0.0  ;;  %v2866_v44 = vrot.slane %v2865_v41, 2 }
0x21d1   :  { %2793 = vadd.xlane.f32.xlu1 %v2792_v33 }
0x21d2   :  { %v2867_v0 = vadd.f32 %v2866_v44, %v2865_v41 }
0x21d4   :  { %v2868_v43 = vrot.slane %v2867_v0, 1 }
0x21d6   :  { %v2869_v45 = vadd.f32 %v2868_v43, %v2867_v0 }
0x21e2   :  { %2836 = vperm.xlu1 %3558, %v2828_v30  }
0x21e6   :  { %2872 = vperm.xlu1 %3558, %v2862_v16  }
0x225c   :  { %v2791_v35 = vpop.xlane.xlu0 %2790 }
0x225d   :  { %v2795_v37 = vmul.f32 0.03125, %v2791_v35 }
0x225e   :  { %v2794_v60 = vpop.xlane.xlu1 %2793 }
0x225f   :  { %v2797_v38 = vsub.f32 %v2787_v18, %v2795_v37  ;;  %v2796_v39 = vmul.f32 0.03125, %v2794_v60  ;;  %v3073_v37 = vld [vmem:[%s4468_s6 + $0x20] ss:$0 sm:$0xff] }
0x2261   :  { %v2798_v9 = vsub.f32 %v2788_v23, %v2796_v39  ;;  %v2799_v40 = vmul.f32 %v2797_v38, %v2797_v38 }
0x2262   :  { %v2837_v53 = vpop.permute.xlu1 %2836 }
0x2263   :  { %v2801_v1 = vsel %vm164_vm7, %v2799_v40, 0.0  ;;  %v2800_v3 = vmul.f32 %v2798_v9, %v2798_v9 }
0x2264   :  { %2802 = vadd.xlane.f32.xlu0 %v2801_v1 }
0x2265   :  { %v2804_v55 = vsel %vm164_vm7, %v2800_v3, 0.0 }
0x2266   :  { %2805 = vadd.xlane.f32.xlu1 %v2804_v55  ;;  %v2873_v54 = vpop.permute.xlu1 %2872 }
0x2277   :  { %2877 = vperm.xlu1 %3558, %v2869_v45  }
0x227a   :  { %2831 = vperm.xlu0 %3557, %v2827_v36  }
0x22f1   :  { %v2803_v56 = vpop.xlane.xlu0 %2802 }
0x22f2   :  { %v2807_v2 = vmul.f32 0.03125, %v2803_v56 }
0x22f3   :  { %v2806_v28 = vpop.xlane.xlu1 %2805 }
0x22f4   :  { %v2809_v32 = vadd.f32 1e-12, %v2807_v2  ;;  %v2808_v5 = vmul.f32 0.03125, %v2806_v28 }
0x22f6   :  { %3667 = vrsqrt.f32 %v2809_v32  ;;  %v2810_v6 = vadd.f32 1e-12, %v2808_v5 }
0x22f7   :  { %v2878_v21 = vpop.permute.xlu1 %2877 }
0x22f8   :  { %3669 = vrsqrt.f32 %v2810_v6 }
0x22f9   :  { %v2832_v27 = vpop.permute.xlu0 %2831  ;;  %3671 = vrcp.f32 %v2873_v54 }
0x22fa   :  { %3673 = vrcp.f32 %v2878_v21 }
0x2300   :  { %v3668_v10 = vpop.eup %3667 }
0x2301   :  { %v2813_v11 = vmul.f32 %v3668_v10, %v2797_v38 }
0x2302   :  { %v3670_v42 = vpop.eup %3669 }
0x2303   :  { %v2819_v13 = vmul.f32 %v2818_v58, %v2813_v11  ;;  %v2814_v14 = vmul.f32 %v3670_v42, %v2798_v9  ;;  %v3672_v29 = vpop.eup %3671 }
0x2304   :  { %v3674_v30 = vpop.eup %3673 }
0x2305   :  { %v2825_v63 = vadd.f32 %v2824_v12, %v2819_v13  ;;  %v2820_v36 = vmul.f32 %v2818_v58, %v2814_v14 }
0x2307   :  { %v2826_v61 = vadd.f32 %v2824_v12, %v2820_v36  ;;  %v2839_v24 = vmul.f32 %v2832_v27, %v2825_v63 }
0x2309   :  { %v2840_v17 = vmul.f32 %v2837_v53, %v2826_v61  ;;  %v2841_v4 = vsel %vm164_vm7, %v2839_v24, 0.0 }
0x230a   :  { %v2842_v18 = vrot.slane %v2841_v4, 4 }
0x230b   :  { %v2848_v57 = vsel %vm164_vm7, %v2840_v17, 0.0 }
0x230c   :  { %v2843_v22 = vadd.f32 %v2842_v18, %v2841_v4  ;;  %v2849_v19 = vrot.slane %v2848_v57, 4 }
0x230e   :  { %v2844_v62 = vrot.slane %v2843_v22, 2  ;;  %v2850_v7 = vadd.f32 %v2849_v19, %v2848_v57 }
0x2310   :  { %v2845_v23 = vadd.f32 %v2844_v62, %v2843_v22  ;;  %v2851_v15 = vrot.slane %v2850_v7, 2 }
0x2312   :  { %v2846_v25 = vrot.slane %v2845_v23, 1  ;;  %v2852_v33 = vadd.f32 %v2851_v15, %v2850_v7 }
0x2314   :  { %v2847_v20 = vadd.f32 %v2846_v25, %v2845_v23  ;;  %v2853_v26 = vrot.slane %v2852_v33, 1 }
0x2316   :  { %v2854_v31 = vadd.f32 %v2853_v26, %v2852_v33  ;;  %v2881_v16 = vmul.f32 %v3672_v29, %v2847_v20 }
0x2318   :  { %v2883_v34 = vmul.f32 %v3674_v30, %v2854_v31 }
0x231a   :  { %v2896_v35 = vsel %vm2895_vm15, %v2883_v34, %v2881_v16 }
0x231b   :  { %3477 = vmatmul.mubr.msk.f32.vlgmr.msra.gmra.mrb[2].mxu0 %vm164_vm7, %v2896_v35 }
0x23ee   :  { %v2965_v60 = vpop.f32.mrb[2].mxu0 }
0x23ef   :  { %v2966_v59 = vadd.f32 %v3073_v37, %v2965_v60  ;;  %v3478_v38 = vpop.f32.mrb[3].mxu0 }
0x23f1   :  { %2969 = vst [vmem:[#allocation5] sm:$0x3] %v2966_v59 }
0x23f2   :  { %3712 = shalt.err (!%p3709_p12)
}
0x23f3   :  { %s3713_s29 = scalar_lea.hbm %s4469_s7, 32 }
0x23f4   :  { %p3714_p13 = scmp.ne.s32.totalorder %s4469_s7, %s3713_s29  ;;  %p3717_p0 = scmp.lt.u32.totalorder %s3713_s29, %s4469_s7 }
0x23f6   :  { %p3719_p1 = pnand %p3717_p0, %p3714_p13 }
0x23f8   :  { %3722 = shalt.err (!%p3719_p1)
}
0x23f9   :  { %2979 = dma.vmem_to_hbm [thread:$0]  %s2977_s0, 32, %s4469_s7, [#allocation4]  }
0x23fa   :  { %3725 = dma.done.wait [#allocation4], 32  }
0x23fb   :  { %3726 = vsyncadd [#allocation4], 4294967264 }
0x23fc   :  { %2983 = vsyncpa [#allocation3], 1 }
0x23fd   :  { %2984 = vsyncpa [#allocation4], 1 }

</bundles_post_ra>
